<compile_context>
chip_gen: v6e
topology: v6e:2x2x1
jax: 0.10.0
libtpu: 0.0.40
codegen_flags: <defaults>
</compile_context>

<pallas_src>
import math

import jax
import jax.numpy as jnp
from jax.experimental import pallas as pl

# ----------------------------- small config ---------------------------------
B = 2               # batch
S = 8               # sequence length
H = 32              # hidden size
NH = 4              # attention heads
HD = H // NH        # head dim
FF = 64             # FFN intermediate size (logical)
FF_PAD = 128        # FFN padded to a full lane tile
L = 2               # transformer layers
VOCAB = 100         # logical vocab size
VOCAB_PAD = 128     # embedding table padded to a full lane tile
NUM_LABELS = 3      # classifier outputs
LANES = 128         # lane-dense padding for the classifier output
LN_EPS = 1e-12
N = B * S           # total tokens
M = NH * S          # lane-dense score width (head, key) pairs
SCALE = 1.0 / math.sqrt(HD)
_INV_SQRT2 = 1.0 / math.sqrt(2.0)


# --------------------------- shared math helpers ----------------------------
def _layernorm(x, g, b):
    mu = jnp.mean(x, axis=-1, keepdims=True)
    var = jnp.mean((x - mu) ** 2, axis=-1, keepdims=True)
    return (x - mu) * jax.lax.rsqrt(var + LN_EPS) * g + b


def _erf(x):
    # Abramowitz & Stegun 7.1.26 polynomial (max abs err ~1.5e-7): exact-GELU
    # parity with PyTorch nn.GELU without relying on an erf lowering in Mosaic.
    p = 0.3275911
    a1, a2, a3, a4, a5 = (0.254829592, -0.284496736, 1.421413741,
                          -1.453152027, 1.061405429)
    ax = jnp.abs(x)
    t = 1.0 / (1.0 + p * ax)
    poly = ((((a5 * t + a4) * t + a3) * t + a2) * t + a1) * t
    y = 1.0 - poly * jnp.exp(-ax * ax)
    return jnp.where(x < 0.0, -y, y)


def _gelu(x):
    return 0.5 * x * (1.0 + _erf(x * _INV_SQRT2))


# ------------------------------ Pallas kernel --------------------------------
def lm_kernel(ids_ref, mask_ref, hm_ref, seg_ref,
              wemb_ref, pemb_ref, embg_ref, embb_ref,
              wqkv_ref, bqkv_ref, wo_ref, bo_ref,
              ln1g_ref, ln1b_ref,
              wff1_ref, bff1_ref, wff2_ref, bff2_ref,
              ln2g_ref, ln2b_ref,
              wc_ref, bc_ref,
              out_ref):
    f32, bf16 = jnp.float32, jnp.bfloat16

    # ---- embedding: one-hot MXU gather + positional add + layernorm --------
    ids = ids_ref[...]                                             # (N, 1) int32
    vocab_iota = jax.lax.broadcasted_iota(jnp.int32, (N, VOCAB_PAD), 1)
    onehot = (vocab_iota == ids).astype(bf16)                      # (N, VOCAB_PAD)
    x = jnp.dot(onehot, wemb_ref[...], preferred_element_type=f32)  # (N, H) f32
    # positional add as a broadcast (the (N,H)->(B,S,H) reshape is tile aligned)
    x = (x.reshape(B, S, H) + pemb_ref[...][None]).reshape(N, H)
    x = _layernorm(x, embg_ref[...], embb_ref[...])                # (N, H)

    # ---- hoisted constants (built ONCE per kernel call) ---------------------
    # key-mask bias tiled over heads along lanes: column h*S+j <- bias[b, j]
    bias = (1.0 - mask_ref[...]) * -1e9                            # (B, S)
    bias_t = jnp.concatenate([bias] * NH, axis=-1)                 # (B, M)
    maskb = jnp.broadcast_to(bias_t[:, None, :], (B, S, M))        # (B, S, M)
    # block-diagonal head mask: hm[h*S+j, c] = 1 iff column c belongs to head h
    head_maskb = jnp.broadcast_to(hm_ref[...][None], (B, M, H))    # (B, M, H)
    seg_ones = seg_ref[...]                                        # (M, M) bf16

    for l in range(L):          # TODO(synk): lax.fori_loop for larger L
        # --- self-attention: ONE fused (H, 3H) QKV matmul per layer ----------
        qkv = jnp.dot(x.astype(bf16), wqkv_ref[l],
                      preferred_element_type=f32) + bqkv_ref[l]    # (N, 3H)
        q3 = (qkv[:, :H] * SCALE).reshape(B, S, H).astype(bf16)    # (B, S, H)
        k3 = qkv[:, H:2 * H].reshape(B, S, H)
        v3 = qkv[:, 2 * H:].reshape(B, S, H)

        # lane-dense multi-head attention via block-diagonal masks:
        # kexp[b, h*S+j, :] = key j restricted to head h's columns, so ONE
        # batched matmul yields every per-head score at lane h*S+j; no per-head
        # slicing / transposing / concatenation is needed anywhere.
        kexp = (jnp.concatenate([k3] * NH, axis=1) * head_maskb).astype(bf16)  # (B,M,H)
        vexp = (jnp.concatenate([v3] * NH, axis=1) * head_maskb).astype(bf16)  # (B,M,H)

        s = jnp.einsum("bqh,bkh->bqk", q3, kexp,
                       preferred_element_type=f32) + maskb         # (B, S, M)
        smax = jnp.max(s, axis=-1, keepdims=True)  # per-row max (constant per segment)
        e = jnp.exp(s - smax).reshape(N, M)
        # per-head (segment) softmax denominator: one matmul with block-diag
        # ones -> denominator already broadcast across each head's S lanes.
        denom = jnp.dot(e.astype(bf16), seg_ones, preferred_element_type=f32)  # (N, M)
        p = (e * pl.reciprocal(denom, approx=True)).reshape(B, S, M).astype(bf16)
        # context: heads come out already merged in standard concat-head layout
        ctx = jnp.einsum("bqk,bkh->bqh", p, vexp,
                         preferred_element_type=f32)                # (B, S, H)
        attn = jnp.dot(ctx.reshape(N, H).astype(bf16), wo_ref[l],
                       preferred_element_type=f32) + bo_ref[l]      # (N, H)
        x = _layernorm(x + attn, ln1g_ref[l], ln1b_ref[l])

        # --- feed forward (lane-dense: padded to 128; pads are exact zeros) --
        ff = _gelu(jnp.dot(x.astype(bf16), wff1_ref[l],
                           preferred_element_type=f32) + bff1_ref[l])
        ff = jnp.dot(ff.astype(bf16), wff2_ref[l],
                     preferred_element_type=f32) + bff2_ref[l]
        x = _layernorm(x + ff, ln2g_ref[l], ln2b_ref[l])

    # TODO(synk): nn.Dropout is identity in eval mode; stochastic dropout not implemented.
    # Lane/sublane-dense classifier over ALL positions (16 x 128 unmasked store);
    # the wrapper picks the [CLS] rows and the first NUM_LABELS lanes.
    out_ref[...] = jnp.dot(x.astype(bf16), wc_ref[...],
                           preferred_element_type=f32) + bc_ref[...]


# ------------------------------ wrapper / glue --------------------------------
def _attn_constants():
    """Static block-diagonal masks (constant-folded under jit)."""
    m_idx = jnp.arange(M)
    c_idx = jnp.arange(H)
    head_mask = ((m_idx[:, None] // S) == (c_idx[None, :] // HD)).astype(jnp.float32)
    seg_ones = ((m_idx[:, None] // S) == (m_idx[None, :] // S)).astype(jnp.bfloat16)
    return head_mask, seg_ones


def init_params(key):
    ks = jax.random.split(key, 11)
    sc = 0.02
    f32, bf16 = jnp.float32, jnp.bfloat16
    wff1 = jnp.zeros((L, H, FF_PAD), f32).at[:, :, :FF].set(
        jax.random.normal(ks[6], (L, H, FF), f32) * sc)
    bff1 = jnp.zeros((L, 1, FF_PAD), f32).at[:, :, :FF].set(
        jax.random.normal(ks[7], (L, 1, FF), f32) * sc)
    wff2 = jnp.zeros((L, FF_PAD, H), f32).at[:, :FF, :].set(
        jax.random.normal(ks[8], (L, FF, H), f32) * sc)
    wc = jnp.zeros((H, LANES), f32).at[:, :NUM_LABELS].set(
        jax.random.normal(ks[10], (H, NUM_LABELS), f32) * sc)
    return dict(
        # matmul weights in bf16 (MXU-native); biases / LN params stay f32.
        word_emb=(jax.random.normal(ks[0], (VOCAB_PAD, H), f32) * sc).astype(bf16),
        pos_emb=jax.random.normal(ks[1], (S, H), f32) * sc,
        emb_ln_g=jnp.ones((1, H), f32),
        emb_ln_b=jnp.zeros((1, H), f32),
        wqkv=(jax.random.normal(ks[2], (L, H, 3 * H), f32) * sc).astype(bf16),
        bqkv=jax.random.normal(ks[3], (L, 1, 3 * H), f32) * sc,
        wo=(jax.random.normal(ks[4], (L, H, H), f32) * sc).astype(bf16),
        bo=jax.random.normal(ks[5], (L, 1, H), f32) * sc,
        ln1g=jnp.ones((L, 1, H), f32),
        ln1b=jnp.zeros((L, 1, H), f32),
        wff1=wff1.astype(bf16), bff1=bff1,
        wff2=wff2.astype(bf16),
        bff2=jax.random.normal(ks[9], (L, 1, H), f32) * sc,
        ln2g=jnp.ones((L, 1, H), f32),
        ln2b=jnp.zeros((L, 1, H), f32),
        wc=wc.astype(bf16),                    # (H, 128), zero-padded past 3
        bc=jnp.zeros((1, LANES), f32),
    )


@jax.jit
def lm_model_forward(params, input_ids, attention_mask):
    """Equivalent of LMModel.forward: returns logits of shape (B, NUM_LABELS)."""
    ids_col = input_ids.reshape(N, 1).astype(jnp.int32)
    mask_f = attention_mask.astype(jnp.float32)                    # (B, S)
    head_mask, seg_ones = _attn_constants()
    logits_full = pl.pallas_call(
        lm_kernel,
        out_shape=jax.ShapeDtypeStruct((N, LANES), jnp.float32),
    )(ids_col, mask_f, head_mask, seg_ones,
      params["word_emb"], params["pos_emb"], params["emb_ln_g"], params["emb_ln_b"],
      params["wqkv"], params["bqkv"], params["wo"], params["bo"],
      params["ln1g"], params["ln1b"],
      params["wff1"], params["bff1"], params["wff2"], params["bff2"],
      params["ln2g"], params["ln2b"],
      params["wc"], params["bc"])
    # rows 0, S, 2S, ... are the [CLS] positions; first NUM_LABELS lanes are real
    return logits_full[0::S, :NUM_LABELS]


def lm_model_forward_ref(params, input_ids, attention_mask):
    """Pure-JAX reference (standard layout, f32 math, exact erf GELU)."""
    f32 = jnp.float32

    def gelu_exact(t):
        return 0.5 * t * (1.0 + jax.lax.erf(t * _INV_SQRT2))

    x = params["word_emb"].astype(f32)[input_ids] + params["pos_emb"][None]   # (B,S,H)
    x = _layernorm(x, params["emb_ln_g"], params["emb_ln_b"])
    bias = (1.0 - attention_mask.astype(f32)) * -1e9                          # (B,S)
    maskb = bias[:, None, None, :]                                            # (B,1,1,S)
    for l in range(L):
        wqkv = params["wqkv"][l].astype(f32)
        qkv = jnp.einsum("bsh,hk->bsk", x, wqkv) + params["bqkv"][l]          # (B,S,3H)
        q, k, v = qkv[..., :H], qkv[..., H:2 * H], qkv[..., 2 * H:]
        q4 = q.reshape(B, S, NH, HD).transpose(0, 2, 1, 3)
        k4 = k.reshape(B, S, NH, HD).transpose(0, 2, 1, 3)
        v4 = v.reshape(B, S, NH, HD).transpose(0, 2, 1, 3)
        s = jnp.einsum("bhqd,bhkd->bhqk", q4, k4) * SCALE + maskb
        p = jax.nn.softmax(s, axis=-1)
        ctx = jnp.einsum("bhqk,bhkd->bhqd", p, v4)
        ctx = ctx.transpose(0, 2, 1, 3).reshape(B, S, H)
        attn = jnp.einsum("bsh,hk->bsk", ctx, params["wo"][l].astype(f32)) + params["bo"][l]
        x = _layernorm(x + attn, params["ln1g"][l], params["ln1b"][l])
        ff = gelu_exact(jnp.einsum("bsh,hf->bsf", x, params["wff1"][l].astype(f32))
                        + params["bff1"][l])
        ff = jnp.einsum("bsf,fh->bsh", ff, params["wff2"][l].astype(f32)) + params["bff2"][l]
        x = _layernorm(x + ff, params["ln2g"][l], params["ln2b"][l])
    cls = x[:, 0, :]
    return cls @ params["wc"].astype(f32)[:, :NUM_LABELS] + params["bc"][:, :NUM_LABELS]


# ----------------------------------- main ------------------------------------
if __name__ == "__main__":
    key = jax.random.PRNGKey(0)
    pkey, ikey = jax.random.split(key)
    params = init_params(pkey)

    input_ids = jax.random.randint(ikey, (B, S), 0, VOCAB, dtype=jnp.int32)
    # guard: ids outside [0, VOCAB) would select untrained / zero embedding rows
    assert int(jnp.min(input_ids)) >= 0 and int(jnp.max(input_ids)) < VOCAB
    attention_mask = jnp.array(
        [[1, 1, 1, 1, 1, 1, 1, 1],
         [1, 1, 1, 1, 1, 1, 0, 0]], dtype=jnp.int32)   # second example padded

    logits = jax.block_until_ready(lm_model_forward(params, input_ids, attention_mask))
    ref = jax.block_until_ready(lm_model_forward_ref(params, input_ids, attention_mask))

    assert logits.shape == (B, NUM_LABELS)
    # Tolerance covers bf16 matmul operands in the kernel (reference uses the
    # same bf16-stored weights but f32 activations), the approx EUP reciprocal
    # in the softmax and the polynomial erf; real bugs are orders larger.
    assert jnp.allclose(logits, ref, atol=5e-3, rtol=5e-3), (logits, ref)
    print("KERNEL_OK")
</pallas_src>

<mosaic_0001>
module attributes {stable_mosaic.version = 11 : i64} {
  func.func @lm_kernel(%arg0: memref<16x1xi32, #tpu.memory_space<vmem>>, %arg1: memref<2x8xf32, #tpu.memory_space<vmem>>, %arg2: memref<32x32xf32, #tpu.memory_space<vmem>>, %arg3: memref<32x32xbf16, #tpu.memory_space<vmem>>, %arg4: memref<128x32xbf16, #tpu.memory_space<vmem>>, %arg5: memref<8x32xf32, #tpu.memory_space<vmem>>, %arg6: memref<1x32xf32, #tpu.memory_space<vmem>>, %arg7: memref<1x32xf32, #tpu.memory_space<vmem>>, %arg8: memref<2x32x96xbf16, #tpu.memory_space<vmem>>, %arg9: memref<2x1x96xf32, #tpu.memory_space<vmem>>, %arg10: memref<2x32x32xbf16, #tpu.memory_space<vmem>>, %arg11: memref<2x1x32xf32, #tpu.memory_space<vmem>>, %arg12: memref<2x1x32xf32, #tpu.memory_space<vmem>>, %arg13: memref<2x1x32xf32, #tpu.memory_space<vmem>>, %arg14: memref<2x32x128xbf16, #tpu.memory_space<vmem>>, %arg15: memref<2x1x128xf32, #tpu.memory_space<vmem>>, %arg16: memref<2x128x32xbf16, #tpu.memory_space<vmem>>, %arg17: memref<2x1x32xf32, #tpu.memory_space<vmem>>, %arg18: memref<2x1x32xf32, #tpu.memory_space<vmem>>, %arg19: memref<2x1x32xf32, #tpu.memory_space<vmem>>, %arg20: memref<32x128xbf16, #tpu.memory_space<vmem>>, %arg21: memref<1x128xf32, #tpu.memory_space<vmem>>, %arg22: memref<16x128xf32, #tpu.memory_space<vmem>>) attributes {dimension_semantics = [], scalar_prefetch = 0 : i64, scratch_operands = 0 : i64, tpu.core_type = #tpu.core_type<tc>} {
    %c0 = arith.constant 0 : index
    %c0_0 = arith.constant 0 : index
    %0 = vector.load %arg0[%c0, %c0_0] : memref<16x1xi32, #tpu.memory_space<vmem>>, vector<16x1xi32>
    %1 = tpu.iota {dimensions = array<i32: 1>} : vector<16x128xi32>
    %2 = vector.broadcast %0 : vector<16x1xi32> to vector<16x128xi32>
    %3 = arith.cmpi eq, %1, %2 : vector<16x128xi32>
    %4 = arith.extui %3 : vector<16x128xi1> to vector<16x128xi32>
    %5 = arith.sitofp %4 : vector<16x128xi32> to vector<16x128xf32>
    %6 = arith.truncf %5 : vector<16x128xf32> to vector<16x128xbf16>
    %c0_1 = arith.constant 0 : index
    %c0_2 = arith.constant 0 : index
    %7 = vector.load %arg4[%c0_1, %c0_2] : memref<128x32xbf16, #tpu.memory_space<vmem>>, vector<128x32xbf16>
    %cst = arith.constant dense<0.000000e+00> : vector<16x32xf32>
    %8 = tpu.matmul %6, %7, %cst {dimension_numbers = #tpu.dot_dimension_numbers<[1], [0], [0], [1], [0, 0, 1, 1], [], []>} : vector<16x128xbf16>, vector<128x32xbf16>, vector<16x32xf32> -> vector<16x32xf32>
    %9 = vector.shape_cast %8 : vector<16x32xf32> to vector<2x8x32xf32>
    %c0_3 = arith.constant 0 : index
    %c0_4 = arith.constant 0 : index
    %10 = vector.load %arg5[%c0_3, %c0_4] : memref<8x32xf32, #tpu.memory_space<vmem>>, vector<8x32xf32>
    %11 = vector.shape_cast %10 : vector<8x32xf32> to vector<1x8x32xf32>
    %12 = vector.broadcast %11 : vector<1x8x32xf32> to vector<2x8x32xf32>
    %13 = arith.addf %9, %12 : vector<2x8x32xf32>
    %14 = vector.shape_cast %13 : vector<2x8x32xf32> to vector<16x32xf32>
    %c0_5 = arith.constant 0 : index
    %c0_6 = arith.constant 0 : index
    %15 = vector.load %arg6[%c0_5, %c0_6] : memref<1x32xf32, #tpu.memory_space<vmem>>, vector<1x32xf32>
    %c0_7 = arith.constant 0 : index
    %c0_8 = arith.constant 0 : index
    %16 = vector.load %arg7[%c0_7, %c0_8] : memref<1x32xf32, #tpu.memory_space<vmem>>, vector<1x32xf32>
    %cst_9 = arith.constant dense<0.000000e+00> : vector<16xf32>
    %17 = vector.multi_reduction <add>, %14, %cst_9 [1] : vector<16x32xf32> to vector<16xf32>
    %18 = vector.shape_cast %17 : vector<16xf32> to vector<16x1xf32>
    %cst_10 = arith.constant 3.200000e+01 : f32
    %19 = vector.broadcast %cst_10 : f32 to vector<16x1xf32>
    %20 = arith.divf %18, %19 : vector<16x1xf32>
    %21 = vector.broadcast %20 : vector<16x1xf32> to vector<16x32xf32>
    %22 = arith.subf %14, %21 : vector<16x32xf32>
    %23 = arith.mulf %22, %22 : vector<16x32xf32>
    %cst_11 = arith.constant dense<0.000000e+00> : vector<16xf32>
    %24 = vector.multi_reduction <add>, %23, %cst_11 [1] : vector<16x32xf32> to vector<16xf32>
    %25 = vector.shape_cast %24 : vector<16xf32> to vector<16x1xf32>
    %cst_12 = arith.constant 3.200000e+01 : f32
    %26 = vector.broadcast %cst_12 : f32 to vector<16x1xf32>
    %27 = arith.divf %25, %26 : vector<16x1xf32>
    %28 = vector.broadcast %20 : vector<16x1xf32> to vector<16x32xf32>
    %29 = arith.subf %14, %28 : vector<16x32xf32>
    %cst_13 = arith.constant 9.99999996E-13 : f32
    %30 = vector.broadcast %cst_13 : f32 to vector<16x1xf32>
    %31 = arith.addf %27, %30 : vector<16x1xf32>
    %32 = math.rsqrt %31 : vector<16x1xf32>
    %33 = vector.broadcast %32 : vector<16x1xf32> to vector<16x32xf32>
    %34 = arith.mulf %29, %33 : vector<16x32xf32>
    %35 = vector.broadcast %15 : vector<1x32xf32> to vector<16x32xf32>
    %36 = arith.mulf %34, %35 : vector<16x32xf32>
    %37 = vector.broadcast %16 : vector<1x32xf32> to vector<16x32xf32>
    %38 = arith.addf %36, %37 : vector<16x32xf32>
    %c0_14 = arith.constant 0 : index
    %c0_15 = arith.constant 0 : index
    %39 = vector.load %arg1[%c0_14, %c0_15] : memref<2x8xf32, #tpu.memory_space<vmem>>, vector<2x8xf32>
    %cst_16 = arith.constant 1.000000e+00 : f32
    %40 = vector.broadcast %cst_16 : f32 to vector<2x8xf32>
    %41 = arith.subf %40, %39 : vector<2x8xf32>
    %cst_17 = arith.constant -1.000000e+09 : f32
    %42 = vector.broadcast %cst_17 : f32 to vector<2x8xf32>
    %43 = arith.mulf %41, %42 : vector<2x8xf32>
    %44 = tpu.concatenate %43, %43, %43, %43 in 1 : vector<2x8xf32>, vector<2x8xf32>, vector<2x8xf32>, vector<2x8xf32> -> vector<2x32xf32>
    %45 = vector.shape_cast %44 : vector<2x32xf32> to vector<2x1x32xf32>
    %46 = vector.shape_cast %45 : vector<2x1x32xf32> to vector<2x1x32xf32>
    %47 = vector.broadcast %46 : vector<2x1x32xf32> to vector<2x8x32xf32>
    %c0_18 = arith.constant 0 : index
    %c0_19 = arith.constant 0 : index
    %48 = vector.load %arg2[%c0_18, %c0_19] : memref<32x32xf32, #tpu.memory_space<vmem>>, vector<32x32xf32>
    %49 = vector.shape_cast %48 : vector<32x32xf32> to vector<1x32x32xf32>
    %50 = vector.shape_cast %49 : vector<1x32x32xf32> to vector<1x32x32xf32>
    %51 = vector.broadcast %50 : vector<1x32x32xf32> to vector<2x32x32xf32>
    %c0_20 = arith.constant 0 : index
    %c0_21 = arith.constant 0 : index
    %52 = vector.load %arg3[%c0_20, %c0_21] : memref<32x32xbf16, #tpu.memory_space<vmem>>, vector<32x32xbf16>
    %53 = arith.truncf %38 : vector<16x32xf32> to vector<16x32xbf16>
    %c0_22 = arith.constant 0 : index
    %c0_23 = arith.constant 0 : index
    %c0_24 = arith.constant 0 : index
    %54 = vector.load %arg8[%c0_22, %c0_23, %c0_24] : memref<2x32x96xbf16, #tpu.memory_space<vmem>>, vector<1x32x96xbf16>
    %55 = vector.shape_cast %54 : vector<1x32x96xbf16> to vector<32x96xbf16>
    %cst_25 = arith.constant dense<0.000000e+00> : vector<16x96xf32>
    %56 = tpu.matmul %53, %55, %cst_25 {dimension_numbers = #tpu.dot_dimension_numbers<[1], [0], [0], [1], [0, 0, 1, 1], [], []>} : vector<16x32xbf16>, vector<32x96xbf16>, vector<16x96xf32> -> vector<16x96xf32>
    %c0_26 = arith.constant 0 : index
    %c0_27 = arith.constant 0 : index
    %c0_28 = arith.constant 0 : index
    %57 = vector.load %arg9[%c0_26, %c0_27, %c0_28] : memref<2x1x96xf32, #tpu.memory_space<vmem>>, vector<1x1x96xf32>
    %58 = vector.shape_cast %57 : vector<1x1x96xf32> to vector<1x96xf32>
    %59 = vector.broadcast %58 : vector<1x96xf32> to vector<16x96xf32>
    %60 = arith.addf %56, %59 : vector<16x96xf32>
    %61 = vector.extract_strided_slice %60 {offsets = [0, 0], sizes = [16, 32], strides = [1, 1]} : vector<16x96xf32> to vector<16x32xf32>
    %cst_29 = arith.constant 0.353553385 : f32
    %62 = vector.broadcast %cst_29 : f32 to vector<16x32xf32>
    %63 = arith.mulf %61, %62 : vector<16x32xf32>
    %64 = vector.shape_cast %63 : vector<16x32xf32> to vector<2x8x32xf32>
    %65 = arith.truncf %64 : vector<2x8x32xf32> to vector<2x8x32xbf16>
    %66 = vector.extract_strided_slice %60 {offsets = [0, 32], sizes = [16, 32], strides = [1, 1]} : vector<16x96xf32> to vector<16x32xf32>
    %67 = vector.shape_cast %66 : vector<16x32xf32> to vector<2x8x32xf32>
    %68 = vector.extract_strided_slice %60 {offsets = [0, 64], sizes = [16, 32], strides = [1, 1]} : vector<16x96xf32> to vector<16x32xf32>
    %69 = vector.shape_cast %68 : vector<16x32xf32> to vector<2x8x32xf32>
    %70 = tpu.concatenate %67, %67, %67, %67 in 1 : vector<2x8x32xf32>, vector<2x8x32xf32>, vector<2x8x32xf32>, vector<2x8x32xf32> -> vector<2x32x32xf32>
    %71 = arith.mulf %70, %51 : vector<2x32x32xf32>
    %72 = arith.truncf %71 : vector<2x32x32xf32> to vector<2x32x32xbf16>
    %73 = tpu.concatenate %69, %69, %69, %69 in 1 : vector<2x8x32xf32>, vector<2x8x32xf32>, vector<2x8x32xf32>, vector<2x8x32xf32> -> vector<2x32x32xf32>
    %74 = arith.mulf %73, %51 : vector<2x32x32xf32>
    %75 = arith.truncf %74 : vector<2x32x32xf32> to vector<2x32x32xbf16>
    "tpu.trace_start"() <{level = 10 : i32, message = "bqh,bkh->bqk"}> : () -> ()
    %cst_30 = arith.constant dense<0.000000e+00> : vector<2x8x32xf32>
    %76 = tpu.matmul %65, %72, %cst_30 {dimension_numbers = #tpu.dot_dimension_numbers<[2], [2], [1], [1], [0, 0, 0, 1, 1, 1], [0], [0]>} : vector<2x8x32xbf16>, vector<2x32x32xbf16>, vector<2x8x32xf32> -> vector<2x8x32xf32>
    "tpu.trace_stop"() : () -> ()
    %77 = arith.addf %76, %47 : vector<2x8x32xf32>
    %cst_31 = arith.constant dense<0xFF800000> : vector<2x8xf32>
    %78 = vector.multi_reduction <maximumf>, %77, %cst_31 [2] : vector<2x8x32xf32> to vector<2x8xf32>
    %79 = vector.shape_cast %78 : vector<2x8xf32> to vector<2x8x1xf32>
    %80 = vector.broadcast %79 : vector<2x8x1xf32> to vector<2x8x32xf32>
    %81 = arith.subf %77, %80 : vector<2x8x32xf32>
    %82 = math.exp %81 : vector<2x8x32xf32>
    %83 = vector.shape_cast %82 : vector<2x8x32xf32> to vector<16x32xf32>
    %84 = arith.truncf %83 : vector<16x32xf32> to vector<16x32xbf16>
    %cst_32 = arith.constant dense<0.000000e+00> : vector<16x32xf32>
    %85 = tpu.matmul %84, %52, %cst_32 {dimension_numbers = #tpu.dot_dimension_numbers<[1], [0], [0], [1], [0, 0, 1, 1], [], []>} : vector<16x32xbf16>, vector<32x32xbf16>, vector<16x32xf32> -> vector<16x32xf32>
    %86 = tpu.reciprocal %85 {approx = true} : vector<16x32xf32> -> vector<16x32xf32>
    %87 = arith.mulf %83, %86 : vector<16x32xf32>
    %88 = vector.shape_cast %87 : vector<16x32xf32> to vector<2x8x32xf32>
    %89 = arith.truncf %88 : vector<2x8x32xf32> to vector<2x8x32xbf16>
    "tpu.trace_start"() <{level = 10 : i32, message = "bqk,bkh->bqh"}> : () -> ()
    %cst_33 = arith.constant dense<0.000000e+00> : vector<2x8x32xf32>
    %90 = tpu.matmul %89, %75, %cst_33 {dimension_numbers = #tpu.dot_dimension_numbers<[2], [1], [1], [2], [0, 0, 0, 1, 1, 2], [0], [0]>} : vector<2x8x32xbf16>, vector<2x32x32xbf16>, vector<2x8x32xf32> -> vector<2x8x32xf32>
    "tpu.trace_stop"() : () -> ()
    %91 = vector.shape_cast %90 : vector<2x8x32xf32> to vector<16x32xf32>
    %92 = arith.truncf %91 : vector<16x32xf32> to vector<16x32xbf16>
    %c0_34 = arith.constant 0 : index
    %c0_35 = arith.constant 0 : index
    %c0_36 = arith.constant 0 : index
    %93 = vector.load %arg10[%c0_34, %c0_35, %c0_36] : memref<2x32x32xbf16, #tpu.memory_space<vmem>>, vector<1x32x32xbf16>
    %94 = vector.shape_cast %93 : vector<1x32x32xbf16> to vector<32x32xbf16>
    %cst_37 = arith.constant dense<0.000000e+00> : vector<16x32xf32>
    %95 = tpu.matmul %92, %94, %cst_37 {dimension_numbers = #tpu.dot_dimension_numbers<[1], [0], [0], [1], [0, 0, 1, 1], [], []>} : vector<16x32xbf16>, vector<32x32xbf16>, vector<16x32xf32> -> vector<16x32xf32>
    %c0_38 = arith.constant 0 : index
    %c0_39 = arith.constant 0 : index
    %c0_40 = arith.constant 0 : index
    %96 = vector.load %arg11[%c0_38, %c0_39, %c0_40] : memref<2x1x32xf32, #tpu.memory_space<vmem>>, vector<1x1x32xf32>
    %97 = vector.shape_cast %96 : vector<1x1x32xf32> to vector<1x32xf32>
    %98 = vector.broadcast %97 : vector<1x32xf32> to vector<16x32xf32>
    %99 = arith.addf %95, %98 : vector<16x32xf32>
    %100 = arith.addf %38, %99 : vector<16x32xf32>
    %c0_41 = arith.constant 0 : index
    %c0_42 = arith.constant 0 : index
    %c0_43 = arith.constant 0 : index
    %101 = vector.load %arg12[%c0_41, %c0_42, %c0_43] : memref<2x1x32xf32, #tpu.memory_space<vmem>>, vector<1x1x32xf32>
    %102 = vector.shape_cast %101 : vector<1x1x32xf32> to vector<1x32xf32>
    %c0_44 = arith.constant 0 : index
    %c0_45 = arith.constant 0 : index
    %c0_46 = arith.constant 0 : index
    %103 = vector.load %arg13[%c0_44, %c0_45, %c0_46] : memref<2x1x32xf32, #tpu.memory_space<vmem>>, vector<1x1x32xf32>
    %104 = vector.shape_cast %103 : vector<1x1x32xf32> to vector<1x32xf32>
    %cst_47 = arith.constant dense<0.000000e+00> : vector<16xf32>
    %105 = vector.multi_reduction <add>, %100, %cst_47 [1] : vector<16x32xf32> to vector<16xf32>
    %106 = vector.shape_cast %105 : vector<16xf32> to vector<16x1xf32>
    %cst_48 = arith.constant 3.200000e+01 : f32
    %107 = vector.broadcast %cst_48 : f32 to vector<16x1xf32>
    %108 = arith.divf %106, %107 : vector<16x1xf32>
    %109 = vector.broadcast %108 : vector<16x1xf32> to vector<16x32xf32>
    %110 = arith.subf %100, %109 : vector<16x32xf32>
    %111 = arith.mulf %110, %110 : vector<16x32xf32>
    %cst_49 = arith.constant dense<0.000000e+00> : vector<16xf32>
    %112 = vector.multi_reduction <add>, %111, %cst_49 [1] : vector<16x32xf32> to vector<16xf32>
    %113 = vector.shape_cast %112 : vector<16xf32> to vector<16x1xf32>
    %cst_50 = arith.constant 3.200000e+01 : f32
    %114 = vector.broadcast %cst_50 : f32 to vector<16x1xf32>
    %115 = arith.divf %113, %114 : vector<16x1xf32>
    %116 = vector.broadcast %108 : vector<16x1xf32> to vector<16x32xf32>
    %117 = arith.subf %100, %116 : vector<16x32xf32>
    %cst_51 = arith.constant 9.99999996E-13 : f32
    %118 = vector.broadcast %cst_51 : f32 to vector<16x1xf32>
    %119 = arith.addf %115, %118 : vector<16x1xf32>
    %120 = math.rsqrt %119 : vector<16x1xf32>
    %121 = vector.broadcast %120 : vector<16x1xf32> to vector<16x32xf32>
    %122 = arith.mulf %117, %121 : vector<16x32xf32>
    %123 = vector.broadcast %102 : vector<1x32xf32> to vector<16x32xf32>
    %124 = arith.mulf %122, %123 : vector<16x32xf32>
    %125 = vector.broadcast %104 : vector<1x32xf32> to vector<16x32xf32>
    %126 = arith.addf %124, %125 : vector<16x32xf32>
    %127 = arith.truncf %126 : vector<16x32xf32> to vector<16x32xbf16>
    %c0_52 = arith.constant 0 : index
    %c0_53 = arith.constant 0 : index
    %c0_54 = arith.constant 0 : index
    %128 = vector.load %arg14[%c0_52, %c0_53, %c0_54] : memref<2x32x128xbf16, #tpu.memory_space<vmem>>, vector<1x32x128xbf16>
    %129 = vector.shape_cast %128 : vector<1x32x128xbf16> to vector<32x128xbf16>
    %cst_55 = arith.constant dense<0.000000e+00> : vector<16x128xf32>
    %130 = tpu.matmul %127, %129, %cst_55 {dimension_numbers = #tpu.dot_dimension_numbers<[1], [0], [0], [1], [0, 0, 1, 1], [], []>} : vector<16x32xbf16>, vector<32x128xbf16>, vector<16x128xf32> -> vector<16x128xf32>
    %c0_56 = arith.constant 0 : index
    %c0_57 = arith.constant 0 : index
    %c0_58 = arith.constant 0 : index
    %131 = vector.load %arg15[%c0_56, %c0_57, %c0_58] : memref<2x1x128xf32, #tpu.memory_space<vmem>>, vector<1x1x128xf32>
    %132 = vector.shape_cast %131 : vector<1x1x128xf32> to vector<1x128xf32>
    %133 = vector.broadcast %132 : vector<1x128xf32> to vector<16x128xf32>
    %134 = arith.addf %130, %133 : vector<16x128xf32>
    %cst_59 = arith.constant 5.000000e-01 : f32
    %135 = vector.broadcast %cst_59 : f32 to vector<16x128xf32>
    %136 = arith.mulf %135, %134 : vector<16x128xf32>
    %cst_60 = arith.constant 0.707106769 : f32
    %137 = vector.broadcast %cst_60 : f32 to vector<16x128xf32>
    %138 = arith.mulf %134, %137 : vector<16x128xf32>
    %139 = math.absf %138 : vector<16x128xf32>
    %cst_61 = arith.constant 0.327591091 : f32
    %140 = vector.broadcast %cst_61 : f32 to vector<16x128xf32>
    %141 = arith.mulf %140, %139 : vector<16x128xf32>
    %cst_62 = arith.constant 1.000000e+00 : f32
    %142 = vector.broadcast %cst_62 : f32 to vector<16x128xf32>
    %143 = arith.addf %142, %141 : vector<16x128xf32>
    %cst_63 = arith.constant 1.000000e+00 : f32
    %144 = vector.broadcast %cst_63 : f32 to vector<16x128xf32>
    %145 = arith.divf %144, %143 : vector<16x128xf32>
    %cst_64 = arith.constant 1.06140542 : f32
    %146 = vector.broadcast %cst_64 : f32 to vector<16x128xf32>
    %147 = arith.mulf %146, %145 : vector<16x128xf32>
    %cst_65 = arith.constant -1.45315206 : f32
    %148 = vector.broadcast %cst_65 : f32 to vector<16x128xf32>
    %149 = arith.addf %147, %148 : vector<16x128xf32>
    %150 = arith.mulf %149, %145 : vector<16x128xf32>
    %cst_66 = arith.constant 1.42141378 : f32
    %151 = vector.broadcast %cst_66 : f32 to vector<16x128xf32>
    %152 = arith.addf %150, %151 : vector<16x128xf32>
    %153 = arith.mulf %152, %145 : vector<16x128xf32>
    %cst_67 = arith.constant -0.284496725 : f32
    %154 = vector.broadcast %cst_67 : f32 to vector<16x128xf32>
    %155 = arith.addf %153, %154 : vector<16x128xf32>
    %156 = arith.mulf %155, %145 : vector<16x128xf32>
    %cst_68 = arith.constant 0.254829586 : f32
    %157 = vector.broadcast %cst_68 : f32 to vector<16x128xf32>
    %158 = arith.addf %156, %157 : vector<16x128xf32>
    %159 = arith.mulf %158, %145 : vector<16x128xf32>
    %cst_69 = arith.constant 0.000000e+00 : f32
    %160 = vector.broadcast %cst_69 : f32 to vector<16x128xf32>
    %161 = arith.subf %160, %139 : vector<16x128xf32>
    %162 = arith.mulf %161, %139 : vector<16x128xf32>
    %163 = math.exp %162 : vector<16x128xf32>
    %164 = arith.mulf %159, %163 : vector<16x128xf32>
    %cst_70 = arith.constant 1.000000e+00 : f32
    %165 = vector.broadcast %cst_70 : f32 to vector<16x128xf32>
    %166 = arith.subf %165, %164 : vector<16x128xf32>
    %cst_71 = arith.constant 0.000000e+00 : f32
    %167 = vector.broadcast %cst_71 : f32 to vector<16x128xf32>
    %168 = arith.cmpf olt, %138, %167 : vector<16x128xf32>
    %cst_72 = arith.constant 0.000000e+00 : f32
    %169 = vector.broadcast %cst_72 : f32 to vector<16x128xf32>
    %170 = arith.subf %169, %166 : vector<16x128xf32>
    %171 = arith.select %168, %170, %166 : vector<16x128xi1>, vector<16x128xf32>
    %cst_73 = arith.constant 1.000000e+00 : f32
    %172 = vector.broadcast %cst_73 : f32 to vector<16x128xf32>
    %173 = arith.addf %172, %171 : vector<16x128xf32>
    %174 = arith.mulf %136, %173 : vector<16x128xf32>
    %175 = arith.truncf %174 : vector<16x128xf32> to vector<16x128xbf16>
    %c0_74 = arith.constant 0 : index
    %c0_75 = arith.constant 0 : index
    %c0_76 = arith.constant 0 : index
    %176 = vector.load %arg16[%c0_74, %c0_75, %c0_76] : memref<2x128x32xbf16, #tpu.memory_space<vmem>>, vector<1x128x32xbf16>
    %177 = vector.shape_cast %176 : vector<1x128x32xbf16> to vector<128x32xbf16>
    %cst_77 = arith.constant dense<0.000000e+00> : vector<16x32xf32>
    %178 = tpu.matmul %175, %177, %cst_77 {dimension_numbers = #tpu.dot_dimension_numbers<[1], [0], [0], [1], [0, 0, 1, 1], [], []>} : vector<16x128xbf16>, vector<128x32xbf16>, vector<16x32xf32> -> vector<16x32xf32>
    %c0_78 = arith.constant 0 : index
    %c0_79 = arith.constant 0 : index
    %c0_80 = arith.constant 0 : index
    %179 = vector.load %arg17[%c0_78, %c0_79, %c0_80] : memref<2x1x32xf32, #tpu.memory_space<vmem>>, vector<1x1x32xf32>
    %180 = vector.shape_cast %179 : vector<1x1x32xf32> to vector<1x32xf32>
    %181 = vector.broadcast %180 : vector<1x32xf32> to vector<16x32xf32>
    %182 = arith.addf %178, %181 : vector<16x32xf32>
    %183 = arith.addf %126, %182 : vector<16x32xf32>
    %c0_81 = arith.constant 0 : index
    %c0_82 = arith.constant 0 : index
    %c0_83 = arith.constant 0 : index
    %184 = vector.load %arg18[%c0_81, %c0_82, %c0_83] : memref<2x1x32xf32, #tpu.memory_space<vmem>>, vector<1x1x32xf32>
    %185 = vector.shape_cast %184 : vector<1x1x32xf32> to vector<1x32xf32>
    %c0_84 = arith.constant 0 : index
    %c0_85 = arith.constant 0 : index
    %c0_86 = arith.constant 0 : index
    %186 = vector.load %arg19[%c0_84, %c0_85, %c0_86] : memref<2x1x32xf32, #tpu.memory_space<vmem>>, vector<1x1x32xf32>
    %187 = vector.shape_cast %186 : vector<1x1x32xf32> to vector<1x32xf32>
    %cst_87 = arith.constant dense<0.000000e+00> : vector<16xf32>
    %188 = vector.multi_reduction <add>, %183, %cst_87 [1] : vector<16x32xf32> to vector<16xf32>
    %189 = vector.shape_cast %188 : vector<16xf32> to vector<16x1xf32>
    %cst_88 = arith.constant 3.200000e+01 : f32
    %190 = vector.broadcast %cst_88 : f32 to vector<16x1xf32>
    %191 = arith.divf %189, %190 : vector<16x1xf32>
    %192 = vector.broadcast %191 : vector<16x1xf32> to vector<16x32xf32>
    %193 = arith.subf %183, %192 : vector<16x32xf32>
    %194 = arith.mulf %193, %193 : vector<16x32xf32>
    %cst_89 = arith.constant dense<0.000000e+00> : vector<16xf32>
    %195 = vector.multi_reduction <add>, %194, %cst_89 [1] : vector<16x32xf32> to vector<16xf32>
    %196 = vector.shape_cast %195 : vector<16xf32> to vector<16x1xf32>
    %cst_90 = arith.constant 3.200000e+01 : f32
    %197 = vector.broadcast %cst_90 : f32 to vector<16x1xf32>
    %198 = arith.divf %196, %197 : vector<16x1xf32>
    %199 = vector.broadcast %191 : vector<16x1xf32> to vector<16x32xf32>
    %200 = arith.subf %183, %199 : vector<16x32xf32>
    %cst_91 = arith.constant 9.99999996E-13 : f32
    %201 = vector.broadcast %cst_91 : f32 to vector<16x1xf32>
    %202 = arith.addf %198, %201 : vector<16x1xf32>
    %203 = math.rsqrt %202 : vector<16x1xf32>
    %204 = vector.broadcast %203 : vector<16x1xf32> to vector<16x32xf32>
    %205 = arith.mulf %200, %204 : vector<16x32xf32>
    %206 = vector.broadcast %185 : vector<1x32xf32> to vector<16x32xf32>
    %207 = arith.mulf %205, %206 : vector<16x32xf32>
    %208 = vector.broadcast %187 : vector<1x32xf32> to vector<16x32xf32>
    %209 = arith.addf %207, %208 : vector<16x32xf32>
    %210 = arith.truncf %209 : vector<16x32xf32> to vector<16x32xbf16>
    %c1 = arith.constant 1 : index
    %c0_92 = arith.constant 0 : index
    %c0_93 = arith.constant 0 : index
    %211 = vector.load %arg8[%c1, %c0_92, %c0_93] : memref<2x32x96xbf16, #tpu.memory_space<vmem>>, vector<1x32x96xbf16>
    %212 = vector.shape_cast %211 : vector<1x32x96xbf16> to vector<32x96xbf16>
    %cst_94 = arith.constant dense<0.000000e+00> : vector<16x96xf32>
    %213 = tpu.matmul %210, %212, %cst_94 {dimension_numbers = #tpu.dot_dimension_numbers<[1], [0], [0], [1], [0, 0, 1, 1], [], []>} : vector<16x32xbf16>, vector<32x96xbf16>, vector<16x96xf32> -> vector<16x96xf32>
    %c1_95 = arith.constant 1 : index
    %c0_96 = arith.constant 0 : index
    %c0_97 = arith.constant 0 : index
    %214 = vector.load %arg9[%c1_95, %c0_96, %c0_97] : memref<2x1x96xf32, #tpu.memory_space<vmem>>, vector<1x1x96xf32>
    %215 = vector.shape_cast %214 : vector<1x1x96xf32> to vector<1x96xf32>
    %216 = vector.broadcast %215 : vector<1x96xf32> to vector<16x96xf32>
    %217 = arith.addf %213, %216 : vector<16x96xf32>
    %218 = vector.extract_strided_slice %217 {offsets = [0, 0], sizes = [16, 32], strides = [1, 1]} : vector<16x96xf32> to vector<16x32xf32>
    %cst_98 = arith.constant 0.353553385 : f32
    %219 = vector.broadcast %cst_98 : f32 to vector<16x32xf32>
    %220 = arith.mulf %218, %219 : vector<16x32xf32>
    %221 = vector.shape_cast %220 : vector<16x32xf32> to vector<2x8x32xf32>
    %222 = arith.truncf %221 : vector<2x8x32xf32> to vector<2x8x32xbf16>
    %223 = vector.extract_strided_slice %217 {offsets = [0, 32], sizes = [16, 32], strides = [1, 1]} : vector<16x96xf32> to vector<16x32xf32>
    %224 = vector.shape_cast %223 : vector<16x32xf32> to vector<2x8x32xf32>
    %225 = vector.extract_strided_slice %217 {offsets = [0, 64], sizes = [16, 32], strides = [1, 1]} : vector<16x96xf32> to vector<16x32xf32>
    %226 = vector.shape_cast %225 : vector<16x32xf32> to vector<2x8x32xf32>
    %227 = tpu.concatenate %224, %224, %224, %224 in 1 : vector<2x8x32xf32>, vector<2x8x32xf32>, vector<2x8x32xf32>, vector<2x8x32xf32> -> vector<2x32x32xf32>
    %228 = arith.mulf %227, %51 : vector<2x32x32xf32>
    %229 = arith.truncf %228 : vector<2x32x32xf32> to vector<2x32x32xbf16>
    %230 = tpu.concatenate %226, %226, %226, %226 in 1 : vector<2x8x32xf32>, vector<2x8x32xf32>, vector<2x8x32xf32>, vector<2x8x32xf32> -> vector<2x32x32xf32>
    %231 = arith.mulf %230, %51 : vector<2x32x32xf32>
    %232 = arith.truncf %231 : vector<2x32x32xf32> to vector<2x32x32xbf16>
    "tpu.trace_start"() <{level = 10 : i32, message = "bqh,bkh->bqk"}> : () -> ()
    %cst_99 = arith.constant dense<0.000000e+00> : vector<2x8x32xf32>
    %233 = tpu.matmul %222, %229, %cst_99 {dimension_numbers = #tpu.dot_dimension_numbers<[2], [2], [1], [1], [0, 0, 0, 1, 1, 1], [0], [0]>} : vector<2x8x32xbf16>, vector<2x32x32xbf16>, vector<2x8x32xf32> -> vector<2x8x32xf32>
    "tpu.trace_stop"() : () -> ()
    %234 = arith.addf %233, %47 : vector<2x8x32xf32>
    %cst_100 = arith.constant dense<0xFF800000> : vector<2x8xf32>
    %235 = vector.multi_reduction <maximumf>, %234, %cst_100 [2] : vector<2x8x32xf32> to vector<2x8xf32>
    %236 = vector.shape_cast %235 : vector<2x8xf32> to vector<2x8x1xf32>
    %237 = vector.broadcast %236 : vector<2x8x1xf32> to vector<2x8x32xf32>
    %238 = arith.subf %234, %237 : vector<2x8x32xf32>
    %239 = math.exp %238 : vector<2x8x32xf32>
    %240 = vector.shape_cast %239 : vector<2x8x32xf32> to vector<16x32xf32>
    %241 = arith.truncf %240 : vector<16x32xf32> to vector<16x32xbf16>
    %cst_101 = arith.constant dense<0.000000e+00> : vector<16x32xf32>
    %242 = tpu.matmul %241, %52, %cst_101 {dimension_numbers = #tpu.dot_dimension_numbers<[1], [0], [0], [1], [0, 0, 1, 1], [], []>} : vector<16x32xbf16>, vector<32x32xbf16>, vector<16x32xf32> -> vector<16x32xf32>
    %243 = tpu.reciprocal %242 {approx = true} : vector<16x32xf32> -> vector<16x32xf32>
    %244 = arith.mulf %240, %243 : vector<16x32xf32>
    %245 = vector.shape_cast %244 : vector<16x32xf32> to vector<2x8x32xf32>
    %246 = arith.truncf %245 : vector<2x8x32xf32> to vector<2x8x32xbf16>
    "tpu.trace_start"() <{level = 10 : i32, message = "bqk,bkh->bqh"}> : () -> ()
    %cst_102 = arith.constant dense<0.000000e+00> : vector<2x8x32xf32>
    %247 = tpu.matmul %246, %232, %cst_102 {dimension_numbers = #tpu.dot_dimension_numbers<[2], [1], [1], [2], [0, 0, 0, 1, 1, 2], [0], [0]>} : vector<2x8x32xbf16>, vector<2x32x32xbf16>, vector<2x8x32xf32> -> vector<2x8x32xf32>
    "tpu.trace_stop"() : () -> ()
    %248 = vector.shape_cast %247 : vector<2x8x32xf32> to vector<16x32xf32>
    %249 = arith.truncf %248 : vector<16x32xf32> to vector<16x32xbf16>
    %c1_103 = arith.constant 1 : index
    %c0_104 = arith.constant 0 : index
    %c0_105 = arith.constant 0 : index
    %250 = vector.load %arg10[%c1_103, %c0_104, %c0_105] : memref<2x32x32xbf16, #tpu.memory_space<vmem>>, vector<1x32x32xbf16>
    %251 = vector.shape_cast %250 : vector<1x32x32xbf16> to vector<32x32xbf16>
    %cst_106 = arith.constant dense<0.000000e+00> : vector<16x32xf32>
    %252 = tpu.matmul %249, %251, %cst_106 {dimension_numbers = #tpu.dot_dimension_numbers<[1], [0], [0], [1], [0, 0, 1, 1], [], []>} : vector<16x32xbf16>, vector<32x32xbf16>, vector<16x32xf32> -> vector<16x32xf32>
    %c1_107 = arith.constant 1 : index
    %c0_108 = arith.constant 0 : index
    %c0_109 = arith.constant 0 : index
    %253 = vector.load %arg11[%c1_107, %c0_108, %c0_109] : memref<2x1x32xf32, #tpu.memory_space<vmem>>, vector<1x1x32xf32>
    %254 = vector.shape_cast %253 : vector<1x1x32xf32> to vector<1x32xf32>
    %255 = vector.broadcast %254 : vector<1x32xf32> to vector<16x32xf32>
    %256 = arith.addf %252, %255 : vector<16x32xf32>
    %257 = arith.addf %209, %256 : vector<16x32xf32>
    %c1_110 = arith.constant 1 : index
    %c0_111 = arith.constant 0 : index
    %c0_112 = arith.constant 0 : index
    %258 = vector.load %arg12[%c1_110, %c0_111, %c0_112] : memref<2x1x32xf32, #tpu.memory_space<vmem>>, vector<1x1x32xf32>
    %259 = vector.shape_cast %258 : vector<1x1x32xf32> to vector<1x32xf32>
    %c1_113 = arith.constant 1 : index
    %c0_114 = arith.constant 0 : index
    %c0_115 = arith.constant 0 : index
    %260 = vector.load %arg13[%c1_113, %c0_114, %c0_115] : memref<2x1x32xf32, #tpu.memory_space<vmem>>, vector<1x1x32xf32>
    %261 = vector.shape_cast %260 : vector<1x1x32xf32> to vector<1x32xf32>
    %cst_116 = arith.constant dense<0.000000e+00> : vector<16xf32>
    %262 = vector.multi_reduction <add>, %257, %cst_116 [1] : vector<16x32xf32> to vector<16xf32>
    %263 = vector.shape_cast %262 : vector<16xf32> to vector<16x1xf32>
    %cst_117 = arith.constant 3.200000e+01 : f32
    %264 = vector.broadcast %cst_117 : f32 to vector<16x1xf32>
    %265 = arith.divf %263, %264 : vector<16x1xf32>
    %266 = vector.broadcast %265 : vector<16x1xf32> to vector<16x32xf32>
    %267 = arith.subf %257, %266 : vector<16x32xf32>
    %268 = arith.mulf %267, %267 : vector<16x32xf32>
    %cst_118 = arith.constant dense<0.000000e+00> : vector<16xf32>
    %269 = vector.multi_reduction <add>, %268, %cst_118 [1] : vector<16x32xf32> to vector<16xf32>
    %270 = vector.shape_cast %269 : vector<16xf32> to vector<16x1xf32>
    %cst_119 = arith.constant 3.200000e+01 : f32
    %271 = vector.broadcast %cst_119 : f32 to vector<16x1xf32>
    %272 = arith.divf %270, %271 : vector<16x1xf32>
    %273 = vector.broadcast %265 : vector<16x1xf32> to vector<16x32xf32>
    %274 = arith.subf %257, %273 : vector<16x32xf32>
    %cst_120 = arith.constant 9.99999996E-13 : f32
    %275 = vector.broadcast %cst_120 : f32 to vector<16x1xf32>
    %276 = arith.addf %272, %275 : vector<16x1xf32>
    %277 = math.rsqrt %276 : vector<16x1xf32>
    %278 = vector.broadcast %277 : vector<16x1xf32> to vector<16x32xf32>
    %279 = arith.mulf %274, %278 : vector<16x32xf32>
    %280 = vector.broadcast %259 : vector<1x32xf32> to vector<16x32xf32>
    %281 = arith.mulf %279, %280 : vector<16x32xf32>
    %282 = vector.broadcast %261 : vector<1x32xf32> to vector<16x32xf32>
    %283 = arith.addf %281, %282 : vector<16x32xf32>
    %284 = arith.truncf %283 : vector<16x32xf32> to vector<16x32xbf16>
    %c1_121 = arith.constant 1 : index
    %c0_122 = arith.constant 0 : index
    %c0_123 = arith.constant 0 : index
    %285 = vector.load %arg14[%c1_121, %c0_122, %c0_123] : memref<2x32x128xbf16, #tpu.memory_space<vmem>>, vector<1x32x128xbf16>
    %286 = vector.shape_cast %285 : vector<1x32x128xbf16> to vector<32x128xbf16>
    %cst_124 = arith.constant dense<0.000000e+00> : vector<16x128xf32>
    %287 = tpu.matmul %284, %286, %cst_124 {dimension_numbers = #tpu.dot_dimension_numbers<[1], [0], [0], [1], [0, 0, 1, 1], [], []>} : vector<16x32xbf16>, vector<32x128xbf16>, vector<16x128xf32> -> vector<16x128xf32>
    %c1_125 = arith.constant 1 : index
    %c0_126 = arith.constant 0 : index
    %c0_127 = arith.constant 0 : index
    %288 = vector.load %arg15[%c1_125, %c0_126, %c0_127] : memref<2x1x128xf32, #tpu.memory_space<vmem>>, vector<1x1x128xf32>
    %289 = vector.shape_cast %288 : vector<1x1x128xf32> to vector<1x128xf32>
    %290 = vector.broadcast %289 : vector<1x128xf32> to vector<16x128xf32>
    %291 = arith.addf %287, %290 : vector<16x128xf32>
    %cst_128 = arith.constant 5.000000e-01 : f32
    %292 = vector.broadcast %cst_128 : f32 to vector<16x128xf32>
    %293 = arith.mulf %292, %291 : vector<16x128xf32>
    %cst_129 = arith.constant 0.707106769 : f32
    %294 = vector.broadcast %cst_129 : f32 to vector<16x128xf32>
    %295 = arith.mulf %291, %294 : vector<16x128xf32>
    %296 = math.absf %295 : vector<16x128xf32>
    %cst_130 = arith.constant 0.327591091 : f32
    %297 = vector.broadcast %cst_130 : f32 to vector<16x128xf32>
    %298 = arith.mulf %297, %296 : vector<16x128xf32>
    %cst_131 = arith.constant 1.000000e+00 : f32
    %299 = vector.broadcast %cst_131 : f32 to vector<16x128xf32>
    %300 = arith.addf %299, %298 : vector<16x128xf32>
    %cst_132 = arith.constant 1.000000e+00 : f32
    %301 = vector.broadcast %cst_132 : f32 to vector<16x128xf32>
    %302 = arith.divf %301, %300 : vector<16x128xf32>
    %cst_133 = arith.constant 1.06140542 : f32
    %303 = vector.broadcast %cst_133 : f32 to vector<16x128xf32>
    %304 = arith.mulf %303, %302 : vector<16x128xf32>
    %cst_134 = arith.constant -1.45315206 : f32
    %305 = vector.broadcast %cst_134 : f32 to vector<16x128xf32>
    %306 = arith.addf %304, %305 : vector<16x128xf32>
    %307 = arith.mulf %306, %302 : vector<16x128xf32>
    %cst_135 = arith.constant 1.42141378 : f32
    %308 = vector.broadcast %cst_135 : f32 to vector<16x128xf32>
    %309 = arith.addf %307, %308 : vector<16x128xf32>
    %310 = arith.mulf %309, %302 : vector<16x128xf32>
    %cst_136 = arith.constant -0.284496725 : f32
    %311 = vector.broadcast %cst_136 : f32 to vector<16x128xf32>
    %312 = arith.addf %310, %311 : vector<16x128xf32>
    %313 = arith.mulf %312, %302 : vector<16x128xf32>
    %cst_137 = arith.constant 0.254829586 : f32
    %314 = vector.broadcast %cst_137 : f32 to vector<16x128xf32>
    %315 = arith.addf %313, %314 : vector<16x128xf32>
    %316 = arith.mulf %315, %302 : vector<16x128xf32>
    %cst_138 = arith.constant 0.000000e+00 : f32
    %317 = vector.broadcast %cst_138 : f32 to vector<16x128xf32>
    %318 = arith.subf %317, %296 : vector<16x128xf32>
    %319 = arith.mulf %318, %296 : vector<16x128xf32>
    %320 = math.exp %319 : vector<16x128xf32>
    %321 = arith.mulf %316, %320 : vector<16x128xf32>
    %cst_139 = arith.constant 1.000000e+00 : f32
    %322 = vector.broadcast %cst_139 : f32 to vector<16x128xf32>
    %323 = arith.subf %322, %321 : vector<16x128xf32>
    %cst_140 = arith.constant 0.000000e+00 : f32
    %324 = vector.broadcast %cst_140 : f32 to vector<16x128xf32>
    %325 = arith.cmpf olt, %295, %324 : vector<16x128xf32>
    %cst_141 = arith.constant 0.000000e+00 : f32
    %326 = vector.broadcast %cst_141 : f32 to vector<16x128xf32>
    %327 = arith.subf %326, %323 : vector<16x128xf32>
    %328 = arith.select %325, %327, %323 : vector<16x128xi1>, vector<16x128xf32>
    %cst_142 = arith.constant 1.000000e+00 : f32
    %329 = vector.broadcast %cst_142 : f32 to vector<16x128xf32>
    %330 = arith.addf %329, %328 : vector<16x128xf32>
    %331 = arith.mulf %293, %330 : vector<16x128xf32>
    %332 = arith.truncf %331 : vector<16x128xf32> to vector<16x128xbf16>
    %c1_143 = arith.constant 1 : index
    %c0_144 = arith.constant 0 : index
    %c0_145 = arith.constant 0 : index
    %333 = vector.load %arg16[%c1_143, %c0_144, %c0_145] : memref<2x128x32xbf16, #tpu.memory_space<vmem>>, vector<1x128x32xbf16>
    %334 = vector.shape_cast %333 : vector<1x128x32xbf16> to vector<128x32xbf16>
    %cst_146 = arith.constant dense<0.000000e+00> : vector<16x32xf32>
    %335 = tpu.matmul %332, %334, %cst_146 {dimension_numbers = #tpu.dot_dimension_numbers<[1], [0], [0], [1], [0, 0, 1, 1], [], []>} : vector<16x128xbf16>, vector<128x32xbf16>, vector<16x32xf32> -> vector<16x32xf32>
    %c1_147 = arith.constant 1 : index
    %c0_148 = arith.constant 0 : index
    %c0_149 = arith.constant 0 : index
    %336 = vector.load %arg17[%c1_147, %c0_148, %c0_149] : memref<2x1x32xf32, #tpu.memory_space<vmem>>, vector<1x1x32xf32>
    %337 = vector.shape_cast %336 : vector<1x1x32xf32> to vector<1x32xf32>
    %338 = vector.broadcast %337 : vector<1x32xf32> to vector<16x32xf32>
    %339 = arith.addf %335, %338 : vector<16x32xf32>
    %340 = arith.addf %283, %339 : vector<16x32xf32>
    %c1_150 = arith.constant 1 : index
    %c0_151 = arith.constant 0 : index
    %c0_152 = arith.constant 0 : index
    %341 = vector.load %arg18[%c1_150, %c0_151, %c0_152] : memref<2x1x32xf32, #tpu.memory_space<vmem>>, vector<1x1x32xf32>
    %342 = vector.shape_cast %341 : vector<1x1x32xf32> to vector<1x32xf32>
    %c1_153 = arith.constant 1 : index
    %c0_154 = arith.constant 0 : index
    %c0_155 = arith.constant 0 : index
    %343 = vector.load %arg19[%c1_153, %c0_154, %c0_155] : memref<2x1x32xf32, #tpu.memory_space<vmem>>, vector<1x1x32xf32>
    %344 = vector.shape_cast %343 : vector<1x1x32xf32> to vector<1x32xf32>
    %cst_156 = arith.constant dense<0.000000e+00> : vector<16xf32>
    %345 = vector.multi_reduction <add>, %340, %cst_156 [1] : vector<16x32xf32> to vector<16xf32>
    %346 = vector.shape_cast %345 : vector<16xf32> to vector<16x1xf32>
    %cst_157 = arith.constant 3.200000e+01 : f32
    %347 = vector.broadcast %cst_157 : f32 to vector<16x1xf32>
    %348 = arith.divf %346, %347 : vector<16x1xf32>
    %349 = vector.broadcast %348 : vector<16x1xf32> to vector<16x32xf32>
    %350 = arith.subf %340, %349 : vector<16x32xf32>
    %351 = arith.mulf %350, %350 : vector<16x32xf32>
    %cst_158 = arith.constant dense<0.000000e+00> : vector<16xf32>
    %352 = vector.multi_reduction <add>, %351, %cst_158 [1] : vector<16x32xf32> to vector<16xf32>
    %353 = vector.shape_cast %352 : vector<16xf32> to vector<16x1xf32>
    %cst_159 = arith.constant 3.200000e+01 : f32
    %354 = vector.broadcast %cst_159 : f32 to vector<16x1xf32>
    %355 = arith.divf %353, %354 : vector<16x1xf32>
    %356 = vector.broadcast %348 : vector<16x1xf32> to vector<16x32xf32>
    %357 = arith.subf %340, %356 : vector<16x32xf32>
    %cst_160 = arith.constant 9.99999996E-13 : f32
    %358 = vector.broadcast %cst_160 : f32 to vector<16x1xf32>
    %359 = arith.addf %355, %358 : vector<16x1xf32>
    %360 = math.rsqrt %359 : vector<16x1xf32>
    %361 = vector.broadcast %360 : vector<16x1xf32> to vector<16x32xf32>
    %362 = arith.mulf %357, %361 : vector<16x32xf32>
    %363 = vector.broadcast %342 : vector<1x32xf32> to vector<16x32xf32>
    %364 = arith.mulf %362, %363 : vector<16x32xf32>
    %365 = vector.broadcast %344 : vector<1x32xf32> to vector<16x32xf32>
    %366 = arith.addf %364, %365 : vector<16x32xf32>
    %367 = arith.truncf %366 : vector<16x32xf32> to vector<16x32xbf16>
    %c0_161 = arith.constant 0 : index
    %c0_162 = arith.constant 0 : index
    %368 = vector.load %arg20[%c0_161, %c0_162] : memref<32x128xbf16, #tpu.memory_space<vmem>>, vector<32x128xbf16>
    %cst_163 = arith.constant dense<0.000000e+00> : vector<16x128xf32>
    %369 = tpu.matmul %367, %368, %cst_163 {dimension_numbers = #tpu.dot_dimension_numbers<[1], [0], [0], [1], [0, 0, 1, 1], [], []>} : vector<16x32xbf16>, vector<32x128xbf16>, vector<16x128xf32> -> vector<16x128xf32>
    %c0_164 = arith.constant 0 : index
    %c0_165 = arith.constant 0 : index
    %370 = vector.load %arg21[%c0_164, %c0_165] : memref<1x128xf32, #tpu.memory_space<vmem>>, vector<1x128xf32>
    %371 = vector.broadcast %370 : vector<1x128xf32> to vector<16x128xf32>
    %372 = arith.addf %369, %371 : vector<16x128xf32>
    %c0_166 = arith.constant 0 : index
    %c0_167 = arith.constant 0 : index
    %373 = vector.load %arg22[%c0_166, %c0_167] : memref<16x128xf32, #tpu.memory_space<vmem>>, vector<16x128xf32>
    tpu.vector_store %arg22[%c0_166, %c0_167], %372 {strides = array<i32>} : memref<16x128xf32, #tpu.memory_space<vmem>>, vector<16x128xf32>,
    return
  }
}

</mosaic_0001>

<bundles_post_ra>
// kernel: lm_model_forward.1
= control target key start
LH: loop header
LB: loop body
LE: loop exit
PB: predicated region body
PF: predicated region fallthrough
CT: control target
= control target key end

     0   :  { %v2455_v0 = vmov 0   ;;  %v2456_v2 = vmov 0.0   ;;  %vm2457_vm0 = vmmov 0   ;;  %v74_v12 = vlaneseq  ;;  %s2459_s30 = smov 32   ;;  %s3113_s0 = inlined_call_operand.vmem [shape: s32[16,1], index: 0, kind: input, shape index: {}]   ;;  %s3114_s4 = inlined_call_operand.vmem [shape: bf16[128,32], index: 4, kind: input, shape index: {}]   ;;  %s3115_s5 = inlined_call_operand.vmem [shape: f32[8,32], index: 5, kind: input, shape index: {}]   ;;  %s3116_s8 = inlined_call_operand.vmem [shape: bf16[2,32,96], index: 8, kind: input, shape index: {}]   ;;  %s3117_s2 = inlined_call_operand.vmem [shape: f32[32,32], index: 2, kind: input, shape index: {}]   ;;  %s3118_s6 = inlined_call_operand.vmem [shape: f32[1,32], index: 6, kind: input, shape index: {}]   ;;  %s3119_s7 = inlined_call_operand.vmem [shape: f32[1,32], index: 7, kind: input, shape index: {}]   ;;  %s3120_s9 = inlined_call_operand.vmem [shape: f32[2,1,96], index: 9, kind: input, shape index: {}]   ;;  %s3121_s1 = inlined_call_operand.vmem [shape: f32[2,8], index: 1, kind: input, shape index: {}]   ;;  %s3122_s3 = inlined_call_operand.vmem [shape: bf16[32,32], index: 3, kind: input, shape index: {}]   ;;  %s3123_s10 = inlined_call_operand.vmem [shape: bf16[2,32,32], index: 10, kind: input, shape index: {}]   ;;  %s3124_s11 = inlined_call_operand.vmem [shape: f32[2,1,32], index: 11, kind: input, shape index: {}]   ;;  %s3125_s14 = inlined_call_operand.vmem [shape: bf16[2,32,128], index: 14, kind: input, shape index: {}]   ;;  %s3126_s12 = inlined_call_operand.vmem [shape: f32[2,1,32], index: 12, kind: input, shape index: {}]   ;;  %s3127_s13 = inlined_call_operand.vmem [shape: f32[2,1,32], index: 13, kind: input, shape index: {}]   ;;  %s3128_s16 = inlined_call_operand.vmem [shape: bf16[2,128,32], index: 16, kind: input, shape index: {}]   ;;  %s3129_s15 = inlined_call_operand.vmem [shape: f32[2,1,128], index: 15, kind: input, shape index: {}]   ;;  %s3130_s17 = inlined_call_operand.vmem [shape: f32[2,1,32], index: 17, kind: input, shape index: {}]   ;;  %s3131_s18 = inlined_call_operand.vmem [shape: f32[2,1,32], index: 18, kind: input, shape index: {}]   ;;  %s3132_s19 = inlined_call_operand.vmem [shape: f32[2,1,32], index: 19, kind: input, shape index: {}]   ;;  %s3133_s20 = inlined_call_operand.vmem [shape: bf16[32,128], index: 20, kind: input, shape index: {}]   ;;  %s3134_s21 = inlined_call_operand.vmem [shape: f32[1,128], index: 21, kind: input, shape index: {}]   ;;  %s3135_s22 = inlined_call_operand.vmem [shape: f32[16,128], index: 22, kind: output, shape index: {}]  }
   0x1   :  { %3140 = sst [smem:[#allocation2_spill]] %s3113_s0  ;;  %2362 = vset.pattern.permute.xlu0 %v2455_v0  ;;  %2155 = vmatprep.subr.bf16.mxu0 %v2456_v2  ;;  %v2458_v16 = vmov 1.0|1.0   ;;  %vm199_vm4 = vcmask 261120   ;;  %v1975_v62 = vld [vmem:[%s3120_s9] ss:$0 sm:$0xff] }
   0x2   :  { %3141 = sst [smem:[#allocation3_spill]] %s3114_s4  ;;  %2175 = vmatprep.subr.bf16.mxu1 %v2456_v2  ;;  %2171 = vmatprep.mubr.msk.bf16.mxu0 %vm2457_vm0, %v2456_v2  ;;  %v75_v14 = vand.u32 127, %v74_v12  ;;  %vm256_vm5 = vcmask 64512   ;;  %vm258_vm6 = vcmask 130048   ;;  %vm260_vm7 = vcmask 195584  }
   0x3   :  { %3142 = sst [smem:[#allocation4_spill]] %s3115_s5  ;;  %2179 = vmatprep.mubr.msk.bf16.mxu1 %vm2457_vm0, %v2456_v2 }
   0x4   :  { %3143 = sst [smem:[#allocation5_spill]] %s3116_s8 }
   0x5   :  { %3144 = sst [smem:[#allocation6_spill]] %s3117_s2  ;;  %s2460_s2 = smov 96  }
   0x6   :  { %3145 = sst [smem:[#allocation7_spill]] %s3118_s6  ;;  %s2461_s6 = smov 8  }
   0x7   :  { %3146 = sst [smem:[#allocation8_spill]] %s3119_s7 }
   0x8   :  { %s3147_s29 = sld [smem:[#allocation2_spill]] }
   0x9   :  { %s3148_s0 = sld [smem:[#allocation3_spill]] }
   0xa   :  { %s3149_s24 = sld [smem:[#allocation4_spill]] }
   0xb   :  { %s3150_s26 = sld [smem:[#allocation5_spill]] }
   0xc   :  { %s3152_s5 = sld [smem:[#allocation7_spill]] }
   0xd   :  { %s3153_s28 = sld [smem:[#allocation8_spill]] }
   0xe   :  { %v72_v1 = vld [vmem:[%s3147_s29] sm:$0xff]  ;;  %v73_v4 = vld [vmem:[%s3147_s29 + $0x8] sm:$0xff]  ;;  %s3151_s29 = sld [smem:[#allocation6_spill]] }
   0xf   :  { %77 = vperm.xlu0 %2362, %v72_v1   ;;  %v2363_v3 = vld [vmem:[%s3148_s0 + $0x38] sm:$0xff]   ;;  %v2364_v5 = vld [vmem:[%s3148_s0 + $0x30] sm:$0xff]   ;;  %v2365_v6 = vld [vmem:[%s3148_s0 + $0x28] sm:$0xff]  }
  0x10   :  { %2156 = vmatpush3.bf16.msra.mxu0 %v2363_v3  ;;  %v2366_v7 = vld [vmem:[%s3148_s0 + $0x20] sm:$0xff]   ;;  %v2367_v8 = vld [vmem:[%s3148_s0 + $0x18] sm:$0xff]   ;;  %v2368_v9 = vld [vmem:[%s3148_s0 + $0x10] sm:$0xff]  }
  0x11   :  { %2157 = vmatprep.subr.bf16.mxu0 %v2456_v2  ;;  %v2369_v10 = vld [vmem:[%s3148_s0 + $0x8] sm:$0xff]   ;;  %v2370_v11 = vld [vmem:[%s3148_s0] sm:$0xff]   ;;  %s2462_s0 = smov 24  }
  0x12   :  { %v194_v17 = vld [vmem:[%s3149_s24] sm:$0xff]  ;;  %v2371_v36 = vld [vmem:[%s3150_s26 + $0x8] sm:$0xff]   ;;  %s2463_s24 = smov 16  }
  0x13   :  { %80 = vperm.xlu0 %2362, %v73_v4   ;;  %2176 = vmatpush3.bf16.msra.mxu1 %v2371_v36  ;;  %v2372_v37 = vld [vmem:[%s3150_s26] sm:$0xff]   ;;  %v2464_v36 = vmov 1966171168  }
  0x14   :  { %2158 = vmatpush3.bf16.msra.mxu0 %v2364_v5  ;;  %2177 = vmatprep.subr.bf16.mxu1 %v2456_v2  ;;  %v2646_v38 = vld [vmem:[%s3151_s29 + $0x10] sm:$0xff]  ;;  %v2652_v39 = vld [vmem:[%s3151_s29 + $0x18] sm:$0xff]  ;;  %v2658_v40 = vld [vmem:[%s3151_s29] sm:$0xff] }
  0x15   :  { %2159 = vmatprep.subr.bf16.mxu0 %v2456_v2  ;;  %v2664_v41 = vld [vmem:[%s3151_s29 + $0x8] sm:$0xff]  ;;  %v1973_v50 = vld [vmem:[%s3152_s5] ss:$0 sm:$0xff] }
  0x16   :  { %v1974_v54 = vld [vmem:[%s3153_s28] ss:$0 sm:$0xff] }
  0x17   :  { %2178 = vmatpush3.bf16.msra.mxu1 %v2372_v37  ;;  %v264_v37 = vunpack.c.l.s4 %v2464_v36 }
  0x18   :  { %2160 = vmatpush3.bf16.msra.mxu0 %v2365_v6  ;;  %2183 = vmatprep.subr.bf16.mxu1 %v2456_v2 }
  0x19   :  { %2161 = vmatprep.subr.bf16.mxu0 %v2456_v2 }
  0x1c   :  { %2162 = vmatpush3.bf16.msra.mxu0 %v2366_v7 }
  0x1d   :  { %2163 = vmatprep.subr.bf16.mxu0 %v2456_v2 }
  0x20   :  { %2164 = vmatpush3.bf16.msra.mxu0 %v2367_v8 }
  0x21   :  { %2165 = vmatprep.subr.bf16.mxu0 %v2456_v2 }
  0x24   :  { %2166 = vmatpush3.bf16.msra.mxu0 %v2368_v9 }
  0x25   :  { %2167 = vmatprep.subr.bf16.mxu0 %v2456_v2 }
  0x28   :  { %2168 = vmatpush3.bf16.msra.mxu0 %v2369_v10 }
  0x29   :  { %2169 = vmatprep.subr.bf16.mxu0 %v2456_v2 }
  0x2c   :  { %2170 = vmatpush3.bf16.msra.mxu0 %v2370_v11 }
  0x2d   :  { %2207 = vmatprep.subr.bf16.mxu0 %v2456_v2 }
  0x8a   :  { %v78_v13 = vpop.permute.xlu0 %77 }
  0x8b   :  { %vm82_vm1 = vcmp.eq.s32.totalorder %v75_v14, %v78_v13 }
  0x8e   :  { %v81_v15 = vpop.permute.xlu0 %80 }
  0x8f   :  { %vm83_vm2 = vcmp.eq.s32.totalorder %v75_v14, %v81_v15 }
  0x90   :  { %vm1971_vm3 = vmpackc.low %vm83_vm2, %vm82_vm1 }
  0x91   :  { %2172 = vmatmul.mubr.msk.bf16.vlgmr.msra.gmra.mxu0 %vm1971_vm3, %v2458_v16 }
  0x92   :  { %2211 = vmatprep.mubr.msk.bf16.mxu0 %vm2457_vm0, %v2456_v2 }
 0x151   :  { %v187_v18 = vpop.f32.mrf.mxu0 }
 0x152   :  { %v195_v19 = vadd.f32 %v194_v17, %v187_v18 }
 0x153   :  { %v2173_v20 = vpop.f32.mrf.mxu0 }
 0x154   :  { %v200_v21 = vsel %vm199_vm4, %v195_v19, 0.0  ;;  %v243_v20 = vld [vmem:[%s3121_s1] sm:$0x3]  ;;  %s2465_s1 = smov 64  }
 0x155   :  { %201 = vadd.xlane.f32.xlu1 %v200_v21  ;;  %v190_v22 = vpop.f32.mrf.mxu0  ;;  %v244_v21 = vsub.f32 1.0, %v243_v20 }
 0x156   :  { %v196_v23 = vadd.f32 %v194_v17, %v190_v22 }
 0x157   :  { %v2174_v24 = vpop.f32.mrf.mxu0  ;;  %v245_v22 = vmul.f32 -1e+09, %v244_v21 }
 0x158   :  { %v203_v25 = vsel %vm199_vm4, %v196_v23, 0.0 }
 0x159   :  { %204 = vadd.xlane.f32.xlu1 %v203_v25 }
 0x1de   :  { %v202_v26 = vpop.xlane.xlu1 %201 }
 0x1df   :  { %v207_v27 = vmul.f32 0.03125, %v202_v26 }
 0x1e1   :  { %v209_v28 = vsub.f32 %v195_v19, %v207_v27 }
 0x1e2   :  { %v205_v29 = vpop.xlane.xlu1 %204 }
 0x1e3   :  { %v208_v30 = vmul.f32 0.03125, %v205_v29  ;;  %v211_v31 = vmul.f32 %v209_v28, %v209_v28 }
 0x1e5   :  { %v210_v32 = vsub.f32 %v196_v23, %v208_v30  ;;  %v213_v33 = vsel %vm199_vm4, %v211_v31, 0.0 }
 0x1e6   :  { %214 = vadd.xlane.f32.xlu0 %v213_v33 }
 0x1e7   :  { %v212_v34 = vmul.f32 %v210_v32, %v210_v32 }
 0x1e9   :  { %v216_v35 = vsel %vm199_vm4, %v212_v34, 0.0 }
 0x1ea   :  { %217 = vadd.xlane.f32.xlu1 %v216_v35 }
 0x1fb   :  { %383 = vrot.lane.b32.xlu1 %v2646_v38, %s2459_s30 }
 0x1ff   :  { %385 = vrot.lane.b32.xlu1 %v2652_v39, %s2459_s30 }
 0x203   :  { %379 = vrot.lane.b32.xlu1 %v2658_v40, %s2459_s30 }
 0x207   :  { %381 = vrot.lane.b32.xlu1 %v2664_v41, %s2459_s30 }
 0x26f   :  { %v215_v42 = vpop.xlane.xlu0 %214 }
 0x270   :  { %v219_v43 = vmul.f32 0.03125, %v215_v42 }
 0x272   :  { %v221_v44 = vadd.f32 1e-12, %v219_v43 }
 0x273   :  { %v218_v45 = vpop.xlane.xlu1 %217 }
 0x274   :  { %2403 = vrsqrt.f32 %v221_v44  ;;  %v220_v46 = vmul.f32 0.03125, %v218_v45  ;;  %v267_v44 = vshrl.u32 %v74_v12, 7  ;;  %v265_v45 = vunpack.c.0.s8 %v264_v37 }
 0x276   :  { %v222_v47 = vadd.f32 1e-12, %v220_v46 }
 0x277   :  { %v2682_v59 = vpop.permute.xlu1 %383 }
 0x278   :  { %2405 = vrsqrt.f32 %v222_v47 }
 0x27b   :  { %v2684_v60 = vpop.permute.xlu1 %385 }
 0x27f   :  { %v2686_v61 = vpop.permute.xlu1 %379 }
 0x281   :  { %v2404_v48 = vpop.eup %2403 }
 0x282   :  { %v225_v49 = vmul.f32 %v2404_v48, %v209_v28  ;;  %v268_v48 = vsub.s32 %v265_v45, %v267_v44 }
 0x283   :  { %v2691_v0 = vpop.permute.xlu1 %381 }
 0x284   :  { %v233_v53 = vmul.f32 %v1973_v50, %v225_v49 }
 0x285   :  { %v2406_v51 = vpop.eup %2405 }
 0x286   :  { %v226_v52 = vmul.f32 %v2406_v51, %v210_v32  ;;  %v2673_v56 = vadd.f32 %v1974_v54, %v233_v53 }
 0x288   :  { %v234_v55 = vmul.f32 %v1973_v50, %v226_v52  ;;  %v287_v52 = vsub.s32 0, %v267_v44 }
 0x28a   :  { %v2675_v57 = vadd.f32 %v1974_v54, %v234_v55 }
 0x28c   :  { %v303_v58 = vpack.c.bf16 %v2675_v57, %v2673_v56 }
 0x28e   :  { %2180 = vmatmul.mubr.msk.bf16.vlgmr.msra.gmra.mxu1 %vm199_vm4, %v303_v58 }
 0x28f   :  { %2187 = vmatprep.mubr.msk.bf16.mxu1 %vm2457_vm0, %v2456_v2 }
 0x34e   :  { %v364_v63 = vpop.f32.mrf.mxu1 }
 0x34f   :  { %v2693_v1 = vadd.f32 %v1975_v62, %v364_v63 }
 0x350   :  { %v2181_v3 = vpop.f32.mrf.mxu1 }
 0x351   :  { %v392_v4 = vmul.f32 %v2691_v0, %v2693_v1  ;;  %v393_v5 = vmul.f32 %v2682_v59, %v2693_v1  ;;  %v394_v6 = vmul.f32 %v2684_v60, %v2693_v1  ;;  %v391_v7 = vmul.f32 %v2686_v61, %v2693_v1 }
 0x352   :  { %v367_v8 = vpop.f32.mrf.mxu1  ;;  %v371_v27 = vmul.f32 0.35355338, %v2693_v1 }
 0x353   :  { %v2703_v9 = vadd.f32 %v1975_v62, %v367_v8  ;;  %v400_v10 = vpack.c.bf16 %v394_v6, %v393_v5  ;;  %v399_v11 = vpack.c.bf16 %v392_v4, %v391_v7 }
 0x354   :  { %v2182_v13 = vpop.f32.mrf.mxu1  ;;  %v373_v29 = vpack.c.bf16 %v371_v27, %v371_v27 }
 0x355   :  { %431 = vrot.lane.b32.xlu0 %v400_v10, %s2460_s2  ;;  %429 = vrot.lane.b32.xlu1 %v399_v11, %s2460_s2  ;;  %v397_v14 = vmul.f32 %v2682_v59, %v2703_v9  ;;  %v398_v15 = vmul.f32 %v2684_v60, %v2703_v9  ;;  %v395_v17 = vmul.f32 %v2686_v61, %v2703_v9  ;;  %v372_v33 = vmul.f32 0.35355338, %v2703_v9 }
 0x356   :  { %v396_v18 = vmul.f32 %v2691_v0, %v2703_v9 }
 0x357   :  { %v402_v16 = vpack.c.bf16 %v398_v15, %v397_v14  ;;  %v374_v34 = vpack.c.bf16 %v372_v33, %v372_v33  ;;  %v2752_v14 = vld [vmem:[%s3122_s3 + $0x8] sm:$0xff]  }
 0x358   :  { %v401_v19 = vpack.c.bf16 %v396_v18, %v395_v17 }
 0x359   :  { %486 = vrot.lane.b32.xlu1 %v402_v16, %s2460_s2  ;;  %253 = vrot.lane.b32.xlu0 %v245_v22, %s2462_s0 }
 0x35d   :  { %484 = vrot.lane.b32.xlu1 %v401_v19, %s2460_s2 }
 0x361   :  { %247 = vrot.lane.b32.xlu1 %v245_v22, %s2461_s6 }
 0x365   :  { %250 = vrot.lane.b32.xlu1 %v245_v22, %s2463_s24 }
 0x3c7   :  { %v432_v23 = vpop.permute.xlu0 %431  ;;  %v430_v25 = vpop.permute.xlu1 %429 }
 0x3c8   :  { %v440_v24 = vsel %vm199_vm4, %v432_v23, 0  ;;  %v437_v26 = vsel %vm199_vm4, %v430_v25, 0 }
 0x3c9   :  { %2184 = vmatpush3.bf16.xpose.msra.mxu1 %v440_v24 }
 0x3ca   :  { %2185 = vmatprep.subr.bf16.mxu1 %v2456_v2 }
 0x3cb   :  { %v487_v28 = vpop.permute.xlu1 %486  ;;  %v254_v47 = vpop.permute.xlu0 %253 }
 0x3cc   :  { %v495_v30 = vsel %vm199_vm4, %v487_v28, 0 }
 0x3cf   :  { %v485_v31 = vpop.permute.xlu1 %484 }
 0x3d0   :  { %v492_v32 = vsel %vm199_vm4, %v485_v31, 0 }
 0x3d1   :  { %2186 = vmatpush3.bf16.xpose.msra.mxu1 %v437_v26 }
 0x3d2   :  { %2191 = vmatprep.subr.bf16.mxu1 %v2456_v2 }
 0x3d3   :  { %v248_v35 = vpop.permute.xlu1 %247 }
 0x3d4   :  { %v257_v42 = vsel %vm256_vm5, %v245_v22, %v248_v35 }
 0x3d7   :  { %v251_v43 = vpop.permute.xlu1 %250 }
 0x3d8   :  { %2188 = vmatmul.mubr.msk.bf16.vlgmr.msra.gmra.mxu1 %vm199_vm4, %v373_v29  ;;  %v259_v46 = vsel %vm258_vm6, %v257_v42, %v251_v43 }
 0x3d9   :  { %2192 = vmatpush3.bf16.xpose.msra.mxu1 %v495_v30  ;;  %2195 = vmatprep.mubr.msk.bf16.mxu1 %vm2457_vm0, %v2456_v2  ;;  %v261_v49 = vsel %vm260_vm7, %v259_v46, %v254_v47 }
 0x3da   :  { %2193 = vmatprep.subr.bf16.mxu1 %v2456_v2  ;;  %v269_v50 = vrot.slane %v261_v49, %v268_v48  ;;  %v2375_v49 = vld [vmem:[%s3123_s10 + $0x8] sm:$0xff]  }
 0x3dc   :  { %v277_v51 = vrot.slane %v269_v50, %v268_v48  ;;  %v270_v3 = vcombine.high %v269_v50, %v269_v50 }
 0x3de   :  { %v2737_v53 = vrot.slane %v277_v51, %v287_v52  ;;  %v284_v4 = vrot.slane %v270_v3, %v268_v48 }
 0x3e0   :  { %v2741_v5 = vrot.slane %v284_v4, %v287_v52 }
 0x3e1   :  { %2194 = vmatpush3.bf16.xpose.msra.mxu1 %v492_v32 }
 0x3e2   :  { %2199 = vmatprep.subr.bf16.mxu1 %v2456_v2 }
 0x3e8   :  { %2196 = vmatmul.mubr.msk.bf16.vlgmr.msra.gmra.mxu1 %vm199_vm4, %v374_v34 }
 0x3e9   :  { %2203 = vmatprep.mubr.msk.bf16.mxu1 %vm2457_vm0, %v2456_v2  ;;  %2200 = vmatpush3.bf16.msra.mxu1 %v2752_v14 }
 0x3ea   :  { %2201 = vmatprep.subr.bf16.mxu1 %v2456_v2 }
 0x498   :  { %v476_v54 = vpop.f32.mrf.mxu1 }
 0x499   :  { %v477_v55 = vadd.f32 %v476_v54, %v2737_v53 }
 0x49a   :  { %v2189_v58 = vpop.f32.mrf.mxu1 }
 0x49b   :  { %v537_v62 = vsel %vm199_vm4, %v477_v55, -inf }
 0x49c   :  { %v479_v63 = vpop.f32.mrf.mxu1  ;;  %538 = vmax.xlane.f32.xlu1 %v537_v62 }
 0x49e   :  { %v2190_v12 = vpop.f32.mrf.mxu1 }
 0x4a8   :  { %v531_v6 = vpop.f32.mrf.mxu1 }
 0x4a9   :  { %v532_v7 = vadd.f32 %v531_v6, %v2741_v5 }
 0x4aa   :  { %v2197_v8 = vpop.f32.mrf.mxu1 }
 0x4ab   :  { %v540_v10 = vsel %vm199_vm4, %v532_v7, -inf }
 0x4ac   :  { %v534_v11 = vpop.f32.mrf.mxu1  ;;  %541 = vmax.xlane.f32.xlu0 %v540_v10  ;;  %v1986_v10 = vld [vmem:[%s3124_s11] ss:$0 sm:$0xff] }
 0x4ad   :  { %409 = vrot.lane.b32.xlu1 %v2652_v39, %s2465_s1  ;;  %v2761_v39 = vld [vmem:[%s3122_s3] sm:$0xff]  }
 0x4ae   :  { %v2198_v13 = vpop.f32.mrf.mxu1  ;;  %2202 = vmatpush3.bf16.msra.mxu1 %v2761_v39 }
 0x4af   :  { %2215 = vmatprep.subr.bf16.mxu1 %v2456_v2 }
 0x4b1   :  { %403 = vrot.lane.b32.xlu1 %v2658_v40, %s2465_s1 }
 0x4c2   :  { %407 = vrot.lane.b32.xlu0 %v2646_v38, %s2465_s1 }
 0x4c6   :  { %405 = vrot.lane.b32.xlu0 %v2664_v41, %s2465_s1 }
 0x525   :  { %v539_v40 = vpop.xlane.xlu1 %538 }
 0x526   :  { %v543_v15 = vsub.f32 %v477_v55, %v539_v40  ;;  %v2376_v55 = vld [vmem:[%s3123_s10] sm:$0xff]  }
 0x528   :  { %v545_v17 = vmul.f32 1.442695, %v543_v15 }
 0x529   :  { %v2767_v16 = vpop.permute.xlu1 %409 }
 0x52a   :  { %2407 = vpow2.f32 %v545_v17  ;;  %v418_v20 = vmul.f32 %v2767_v16, %v2693_v1  ;;  %v422_v22 = vmul.f32 %v2767_v16, %v2703_v9 }
 0x52d   :  { %v2775_v41 = vpop.permute.xlu1 %403 }
 0x52e   :  { %v415_v27 = vmul.f32 %v2775_v41, %v2693_v1  ;;  %v419_v29 = vmul.f32 %v2775_v41, %v2703_v9 }
 0x535   :  { %v542_v38 = vpop.xlane.xlu0 %541 }
 0x536   :  { %v544_v18 = vsub.f32 %v532_v7, %v542_v38 }
 0x537   :  { %v2408_v34 = vpop.eup %2407 }
 0x538   :  { %v547_v19 = vmul.f32 1.442695, %v544_v18 }
 0x539   :  { %v2771_v21 = vpop.permute.xlu0 %407 }
 0x53a   :  { %2409 = vpow2.f32 %v547_v19  ;;  %v417_v23 = vmul.f32 %v2771_v21, %v2693_v1  ;;  %v421_v24 = vmul.f32 %v2771_v21, %v2703_v9 }
 0x53c   :  { %v426_v25 = vpack.c.bf16 %v422_v22, %v421_v24  ;;  %v424_v26 = vpack.c.bf16 %v418_v20, %v417_v23 }
 0x53d   :  { %v2783_v28 = vpop.permute.xlu0 %405 }
 0x53e   :  { %v416_v30 = vmul.f32 %v2783_v28, %v2693_v1  ;;  %v420_v31 = vmul.f32 %v2783_v28, %v2703_v9  ;;  %667 = vrot.lane.b32.xlu0 %v426_v25, %s2465_s1  ;;  %616 = vrot.lane.b32.xlu1 %v424_v26, %s2465_s1 }
 0x540   :  { %v425_v32 = vpack.c.bf16 %v420_v31, %v419_v29  ;;  %v423_v33 = vpack.c.bf16 %v416_v30, %v415_v27 }
 0x542   :  { %665 = vrot.lane.b32.xlu0 %v425_v32, %s2465_s1  ;;  %614 = vrot.lane.b32.xlu1 %v423_v33, %s2465_s1  ;;  %v2378_v33 = vld [vmem:[%s3125_s14] sm:$0xff]  }
 0x547   :  { %v2410_v35 = vpop.eup %2409 }
 0x548   :  { %v549_v36 = vpack.c.bf16 %v2410_v35, %v2408_v34 }
 0x54a   :  { %2204 = vmatmul.mubr.msk.bf16.vlgmr.msra.gmra.mxu1 %vm199_vm4, %v549_v36 }
 0x54b   :  { %2219 = vmatprep.mubr.msk.bf16.mxu1 %vm2457_vm0, %v2456_v2 }
 0x5b0   :  { %v617_v1 = vpop.permute.xlu1 %616  ;;  %v668_v9 = vpop.permute.xlu0 %667 }
 0x5b1   :  { %2208 = vmatpush3.bf16.msra.mxu0 %v617_v1  ;;  %2216 = vmatpush3.bf16.msra.mxu1 %v668_v9 }
 0x5b2   :  { %2209 = vmatprep.subr.bf16.mxu0 %v2456_v2  ;;  %2217 = vmatprep.subr.bf16.mxu1 %v2456_v2 }
 0x5b4   :  { %v615_v37 = vpop.permute.xlu1 %614  ;;  %v666_v42 = vpop.permute.xlu0 %665 }
 0x5b5   :  { %2210 = vmatpush3.bf16.msra.mxu0 %v615_v37  ;;  %2218 = vmatpush3.bf16.msra.mxu1 %v666_v42 }
 0x5b6   :  { %2223 = vmatprep.subr.bf16.mxu0 %v2456_v2  ;;  %2231 = vmatprep.subr.bf16.mxu1 %v2456_v2 }
 0x60a   :  { %v599_v43 = vpop.f32.mrf.mxu1 }
 0x60b   :  { %2411 = vrcp.f32 %v599_v43 }
 0x60c   :  { %v2205_v44 = vpop.f32.mrf.mxu1 }
 0x60d   :  { %v1990_v44 = vld [vmem:[%s3126_s12] ss:$0 sm:$0xff] }
 0x60e   :  { %v602_v45 = vpop.f32.mrf.mxu1 }
 0x60f   :  { %2413 = vrcp.f32 %v602_v45 }
 0x610   :  { %v2206_v46 = vpop.f32.mrf.mxu1 }
 0x618   :  { %v2412_v47 = vpop.eup %2411 }
 0x619   :  { %v608_v48 = vmul.f32 %v2412_v47, %v2408_v34 }
 0x61b   :  { %v610_v50 = vpack.c.bf16 %v608_v48, %v608_v48  ;;  %v1991_v48 = vld [vmem:[%s3127_s13] ss:$0 sm:$0xff] }
 0x61c   :  { %v2414_v51 = vpop.eup %2413 }
 0x61d   :  { %2212 = vmatmul.mubr.msk.bf16.vlgmr.msra.gmra.mxu0 %vm199_vm4, %v610_v50  ;;  %v609_v52 = vmul.f32 %v2414_v51, %v2410_v35 }
 0x61e   :  { %2224 = vmatpush3.bf16.msra.mxu0 %v2375_v49  ;;  %2227 = vmatprep.mubr.msk.bf16.mxu0 %vm2457_vm0, %v2456_v2 }
 0x61f   :  { %v611_v54 = vpack.c.bf16 %v609_v52, %v609_v52  ;;  %2225 = vmatprep.subr.bf16.mxu0 %v2456_v2 }
 0x621   :  { %2220 = vmatmul.mubr.msk.bf16.vlgmr.msra.gmra.mxu1 %vm199_vm4, %v611_v54  ;;  %v2379_v54 = vld [vmem:[%s3128_s16 + $0x38] sm:$0xff]  }
 0x622   :  { %2235 = vmatprep.mubr.msk.bf16.mxu1 %vm2457_vm0, %v2456_v2  ;;  %2226 = vmatpush3.bf16.msra.mxu0 %v2376_v55  ;;  %v2380_v55 = vld [vmem:[%s3128_s16 + $0x30] sm:$0xff]  }
 0x623   :  { %2239 = vmatprep.subr.bf16.mxu0 %v2456_v2 }
 0x6dd   :  { %v657_v58 = vpop.f32.mrf.mxu0 }
 0x6df   :  { %v2213_v62 = vpop.f32.mrf.mxu0 }
 0x6e0   :  { %v2382_v62 = vld [vmem:[%s3128_s16 + $0x20] sm:$0xff]  }
 0x6e1   :  { %v660_v63 = vpop.f32.mrf.mxu0  ;;  %v708_v12 = vpop.f32.mrf.mxu1 }
 0x6e2   :  { %v714_v3 = vpack.c.bf16 %v708_v12, %v657_v58  ;;  %v2381_v58 = vld [vmem:[%s3128_s16 + $0x28] sm:$0xff]   ;;  %v2383_v63 = vld [vmem:[%s3128_s16 + $0x18] sm:$0xff]   ;;  %v2384_v12 = vld [vmem:[%s3128_s16 + $0x10] sm:$0xff]  }
 0x6e3   :  { %v2214_v4 = vpop.f32.mrf.mxu0  ;;  %v2221_v6 = vpop.f32.mrf.mxu1 }
 0x6e4   :  { %2228 = vmatmul.mubr.msk.bf16.vlgmr.msra.gmra.mxu0 %vm199_vm4, %v714_v3  ;;  %v2385_v3 = vld [vmem:[%s3128_s16 + $0x8] sm:$0xff]   ;;  %v2386_v4 = vld [vmem:[%s3128_s16] sm:$0xff]  }
 0x6e5   :  { %v711_v7 = vpop.f32.mrf.mxu1  ;;  %2255 = vmatprep.mubr.msk.bf16.mxu0 %vm2457_vm0, %v2456_v2  ;;  %2240 = vmatpush3.bf16.msra.mxu0 %v2379_v54  ;;  %v1992_v6 = vld [vmem:[%s3129_s15] ss:$0 sm:$0xff] }
 0x6e6   :  { %2241 = vmatprep.subr.bf16.mxu0 %v2456_v2 }
 0x6e7   :  { %v2222_v8 = vpop.f32.mrf.mxu1 }
 0x6e9   :  { %2242 = vmatpush3.bf16.msra.mxu0 %v2380_v55 }
 0x6ea   :  { %2243 = vmatprep.subr.bf16.mxu0 %v2456_v2 }
 0x6ed   :  { %2244 = vmatpush3.bf16.msra.mxu0 %v2381_v58 }
 0x6ee   :  { %2245 = vmatprep.subr.bf16.mxu0 %v2456_v2 }
 0x6f1   :  { %2246 = vmatpush3.bf16.msra.mxu0 %v2382_v62 }
 0x6f2   :  { %2247 = vmatprep.subr.bf16.mxu0 %v2456_v2 }
 0x6f5   :  { %2248 = vmatpush3.bf16.msra.mxu0 %v2383_v63 }
 0x6f6   :  { %2249 = vmatprep.subr.bf16.mxu0 %v2456_v2 }
 0x6f9   :  { %2250 = vmatpush3.bf16.msra.mxu0 %v2384_v12 }
 0x6fa   :  { %2251 = vmatprep.subr.bf16.mxu0 %v2456_v2 }
 0x6fd   :  { %2252 = vmatpush3.bf16.msra.mxu0 %v2385_v3 }
 0x6fe   :  { %2253 = vmatprep.subr.bf16.mxu0 %v2456_v2 }
 0x701   :  { %2254 = vmatpush3.bf16.msra.mxu0 %v2386_v4 }
 0x702   :  { %2283 = vmatprep.subr.bf16.mxu0 %v2456_v2 }
 0x7a4   :  { %v775_v11 = vpop.f32.mrf.mxu0 }
 0x7a5   :  { %v776_v13 = vadd.f32 %v1986_v10, %v775_v11 }
 0x7a6   :  { %v2229_v40 = vpop.f32.mrf.mxu0 }
 0x7a7   :  { %v782_v15 = vadd.f32 %v776_v13, %v2673_v56 }
 0x7a8   :  { %v778_v17 = vpop.f32.mrf.mxu0 }
 0x7a9   :  { %v779_v38 = vadd.f32 %v1986_v10, %v778_v17  ;;  %v786_v18 = vsel %vm199_vm4, %v782_v15, 0.0 }
 0x7aa   :  { %787 = vadd.xlane.f32.xlu1 %v786_v18  ;;  %v2230_v19 = vpop.f32.mrf.mxu0 }
 0x7ab   :  { %v783_v20 = vadd.f32 %v779_v38, %v2675_v57  ;;  %v2377_v57 = vld [vmem:[%s3125_s14 + $0x8] sm:$0xff]  }
 0x7ac   :  { %2232 = vmatpush3.bf16.msra.mxu1 %v2377_v57 }
 0x7ad   :  { %v789_v22 = vsel %vm199_vm4, %v783_v20, 0.0  ;;  %2233 = vmatprep.subr.bf16.mxu1 %v2456_v2 }
 0x7ae   :  { %790 = vadd.xlane.f32.xlu0 %v789_v22 }
 0x7b0   :  { %2234 = vmatpush3.bf16.msra.mxu1 %v2378_v33 }
 0x7b1   :  { %2259 = vmatprep.subr.bf16.mxu1 %v2456_v2 }
 0x833   :  { %v788_v23 = vpop.xlane.xlu1 %787 }
 0x834   :  { %v792_v24 = vmul.f32 0.03125, %v788_v23 }
 0x836   :  { %v794_v25 = vsub.f32 %v782_v15, %v792_v24 }
 0x837   :  { %v791_v26 = vpop.xlane.xlu0 %790 }
 0x838   :  { %v793_v27 = vmul.f32 0.03125, %v791_v26  ;;  %v796_v29 = vmul.f32 %v794_v25, %v794_v25 }
 0x83a   :  { %v795_v30 = vsub.f32 %v783_v20, %v793_v27  ;;  %v798_v56 = vsel %vm199_vm4, %v796_v29, 0.0 }
 0x83b   :  { %799 = vadd.xlane.f32.xlu0 %v798_v56 }
 0x83c   :  { %v797_v31 = vmul.f32 %v795_v30, %v795_v30 }
 0x83e   :  { %v801_v32 = vsel %vm199_vm4, %v797_v31, 0.0 }
 0x83f   :  { %802 = vadd.xlane.f32.xlu1 %v801_v32 }
 0x8c4   :  { %v800_v34 = vpop.xlane.xlu0 %799 }
 0x8c5   :  { %v804_v35 = vmul.f32 0.03125, %v800_v34 }
 0x8c7   :  { %v806_v36 = vadd.f32 1e-12, %v804_v35 }
 0x8c8   :  { %v803_v1 = vpop.xlane.xlu1 %802 }
 0x8c9   :  { %2415 = vrsqrt.f32 %v806_v36  ;;  %v805_v9 = vmul.f32 0.03125, %v803_v1 }
 0x8cb   :  { %v807_v37 = vadd.f32 1e-12, %v805_v9 }
 0x8cd   :  { %2417 = vrsqrt.f32 %v807_v37 }
 0x8d6   :  { %v2416_v42 = vpop.eup %2415 }
 0x8d7   :  { %v810_v43 = vmul.f32 %v2416_v42, %v794_v25 }
 0x8d9   :  { %v818_v47 = vmul.f32 %v1990_v44, %v810_v43 }
 0x8da   :  { %v2418_v45 = vpop.eup %2417 }
 0x8db   :  { %v811_v46 = vmul.f32 %v2418_v45, %v795_v30  ;;  %v2842_v50 = vadd.f32 %v1991_v48, %v818_v47 }
 0x8dd   :  { %v819_v49 = vmul.f32 %v1990_v44, %v811_v46 }
 0x8df   :  { %v2844_v51 = vadd.f32 %v1991_v48, %v819_v49 }
 0x8e1   :  { %v828_v52 = vpack.c.bf16 %v2844_v51, %v2842_v50 }
 0x8e3   :  { %2236 = vmatmul.mubr.msk.bf16.vlgmr.msra.gmra.mxu1 %vm199_vm4, %v828_v52 }
 0x8e4   :  { %2263 = vmatprep.mubr.msk.bf16.mxu1 %vm2457_vm0, %v2456_v2 }
 0x9a3   :  { %v889_v7 = vpop.f32.mrf.mxu1 }
 0x9a4   :  { %v890_v8 = vadd.f32 %v1992_v6, %v889_v7 }
 0x9a5   :  { %v2237_v10 = vpop.f32.mrf.mxu1 }
 0x9a6   :  { %v898_v11 = vmul.f32 0.70710677, %v890_v8 }
 0x9a7   :  { %v892_v13 = vpop.f32.mrf.mxu1 }
 0x9a8   :  { %v900_v40 = vand.u32 2147483647, %v898_v11  ;;  %v893_v15 = vadd.f32 %v1992_v6, %v892_v13  ;;  %vm940_vm8 = vcmp.lt.f32.partialorder %v898_v11, 0.0  ;;  %v896_v13 = vmul.f32 0.5, %v890_v8  ;;  %v1996_v8 = vld [vmem:[%s3130_s17] ss:$0 sm:$0xff] }
 0x9a9   :  { %v2238_v17 = vpop.f32.mrf.mxu1 }
 0x9aa   :  { %v902_v38 = vmul.f32 0.3275911, %v900_v40  ;;  %v899_v18 = vmul.f32 0.70710677, %v893_v15  ;;  %v928_v24 = vsub.f32 0.0, %v900_v40 }
 0x9ac   :  { %v904_v19 = vadd.f32 1.0, %v902_v38  ;;  %v901_v20 = vand.u32 2147483647, %v899_v18  ;;  %v930_v25 = vmul.f32 %v928_v24, %v900_v40  ;;  %vm941_vm9 = vcmp.lt.f32.partialorder %v899_v18, 0.0 }
 0x9ad   :  { %v897_v40 = vmul.f32 0.5, %v893_v15 }
 0x9ae   :  { %2419 = vrcp.f32 %v904_v19  ;;  %v903_v22 = vmul.f32 0.3275911, %v901_v20  ;;  %v929_v26 = vsub.f32 0.0, %v901_v20  ;;  %v932_v30 = vmul.f32 1.442695, %v930_v25 }
 0x9b0   :  { %v905_v23 = vadd.f32 1.0, %v903_v22  ;;  %v931_v56 = vmul.f32 %v929_v26, %v901_v20 }
 0x9b2   :  { %2421 = vrcp.f32 %v905_v23  ;;  %v934_v34 = vmul.f32 1.442695, %v931_v56 }
 0x9b3   :  { %2423 = vpow2.f32 %v932_v30 }
 0x9b4   :  { %2425 = vpow2.f32 %v934_v34 }
 0x9bb   :  { %v2420_v27 = vpop.eup %2419 }
 0x9bc   :  { %v910_v29 = vmul.f32 1.0614054, %v2420_v27 }
 0x9be   :  { %v912_v31 = vadd.f32 -1.4531521, %v910_v29 }
 0x9bf   :  { %v2422_v32 = vpop.eup %2421 }
 0x9c0   :  { %v914_v57 = vmul.f32 %v2420_v27, %v912_v31  ;;  %v911_v33 = vmul.f32 1.0614054, %v2422_v32  ;;  %v2424_v49 = vpop.eup %2423 }
 0x9c1   :  { %v2426_v62 = vpop.eup %2425 }
 0x9c2   :  { %v916_v35 = vadd.f32 1.4214138, %v914_v57  ;;  %v913_v36 = vadd.f32 -1.4531521, %v911_v33 }
 0x9c4   :  { %v918_v1 = vmul.f32 %v2420_v27, %v916_v35  ;;  %v915_v9 = vmul.f32 %v2422_v32, %v913_v36  ;;  %v2388_v35 = vld [vmem:[%s3150_s26 + $0x10] sm:$0xff]  }
 0x9c6   :  { %v920_v37 = vadd.f32 -0.28449672, %v918_v1  ;;  %v917_v42 = vadd.f32 1.4214138, %v915_v9 }
 0x9c8   :  { %v922_v43 = vmul.f32 %v2420_v27, %v920_v37  ;;  %v919_v44 = vmul.f32 %v2422_v32, %v917_v42 }
 0x9ca   :  { %v924_v45 = vadd.f32 0.2548296, %v922_v43  ;;  %v921_v46 = vadd.f32 -0.28449672, %v919_v44 }
 0x9cc   :  { %v926_v47 = vmul.f32 %v2420_v27, %v924_v45  ;;  %v923_v48 = vmul.f32 %v2422_v32, %v921_v46  ;;  %v2005_v46 = vld [vmem:[%s3131_s18] ss:$0 sm:$0xff] }
 0x9ce   :  { %v936_v52 = vmul.f32 %v2424_v49, %v926_v47  ;;  %v925_v54 = vadd.f32 0.2548296, %v923_v48 }
 0x9d0   :  { %v938_v55 = vsub.f32 1.0, %v936_v52  ;;  %v927_v58 = vmul.f32 %v2422_v32, %v925_v54  ;;  %v2006_v52 = vld [vmem:[%s3132_s19] ss:$0 sm:$0xff] }
 0x9d2   :  { %v942_v63 = vsub.f32 0.0, %v938_v55  ;;  %v937_v12 = vmul.f32 %v2426_v62, %v927_v58 }
 0x9d4   :  { %v944_v3 = vsel %vm940_vm8, %v942_v63, %v938_v55  ;;  %v939_v4 = vsub.f32 1.0, %v937_v12  ;;  %v2012_v63 = vld [vmem:[%s3120_s9 + $0x1] ss:$0 sm:$0xff] }
 0x9d5   :  { %v946_v7 = vadd.f32 1.0, %v944_v3 }
 0x9d6   :  { %v943_v6 = vsub.f32 0.0, %v939_v4 }
 0x9d7   :  { %v948_v38 = vmul.f32 %v946_v7, %v896_v13 }
 0x9d8   :  { %v945_v10 = vsel %vm941_vm9, %v943_v6, %v939_v4 }
 0x9d9   :  { %v947_v17 = vadd.f32 1.0, %v945_v10 }
 0x9db   :  { %v949_v19 = vmul.f32 %v947_v17, %v897_v40 }
 0x9dd   :  { %v950_v20 = vpack.c.bf16 %v949_v19, %v948_v38 }
 0x9df   :  { %2256 = vmatmul.mubr.bf16.vlgmr.msra.gmra.mxu0 %v950_v20 }
 0x9e0   :  { %2284 = vmatpush3.bf16.msra.mxu0 %v2752_v14  ;;  %2287 = vmatprep.mubr.msk.bf16.mxu0 %vm2457_vm0, %v2456_v2 }
 0x9e1   :  { %2285 = vmatprep.subr.bf16.mxu0 %v2456_v2 }
 0x9e4   :  { %2286 = vmatpush3.bf16.msra.mxu0 %v2761_v39 }
 0x9e5   :  { %2291 = vmatprep.subr.bf16.mxu0 %v2456_v2 }
 0xa9f   :  { %v1056_v11 = vpop.f32.mrf.mxu0 }
 0xaa0   :  { %v1057_v15 = vadd.f32 %v1996_v8, %v1056_v11 }
 0xaa1   :  { %v2257_v18 = vpop.f32.mrf.mxu0 }
 0xaa2   :  { %v1063_v22 = vadd.f32 %v1057_v15, %v2842_v50 }
 0xaa3   :  { %v1059_v23 = vpop.f32.mrf.mxu0 }
 0xaa4   :  { %v1060_v14 = vadd.f32 %v1996_v8, %v1059_v23  ;;  %v1067_v24 = vsel %vm199_vm4, %v1063_v22, 0.0 }
 0xaa5   :  { %1068 = vadd.xlane.f32.xlu0 %v1067_v24  ;;  %v2258_v25 = vpop.f32.mrf.mxu0 }
 0xaa6   :  { %v1064_v26 = vadd.f32 %v1060_v14, %v2844_v51  ;;  %v2387_v51 = vld [vmem:[%s3150_s26 + $0x18] sm:$0xff]  }
 0xaa7   :  { %2260 = vmatpush3.bf16.msra.mxu1 %v2387_v51 }
 0xaa8   :  { %v1070_v39 = vsel %vm199_vm4, %v1064_v26, 0.0  ;;  %2261 = vmatprep.subr.bf16.mxu1 %v2456_v2 }
 0xaa9   :  { %1071 = vadd.xlane.f32.xlu1 %v1070_v39 }
 0xaab   :  { %2262 = vmatpush3.bf16.msra.mxu1 %v2388_v35 }
 0xaac   :  { %2267 = vmatprep.subr.bf16.mxu1 %v2456_v2 }
 0xb2e   :  { %v1069_v27 = vpop.xlane.xlu0 %1068 }
 0xb2f   :  { %v1073_v29 = vmul.f32 0.03125, %v1069_v27 }
 0xb31   :  { %v1075_v30 = vsub.f32 %v1063_v22, %v1073_v29 }
 0xb32   :  { %v1072_v56 = vpop.xlane.xlu1 %1071 }
 0xb33   :  { %v1074_v31 = vmul.f32 0.03125, %v1072_v56  ;;  %v1077_v32 = vmul.f32 %v1075_v30, %v1075_v30 }
 0xb35   :  { %v1076_v57 = vsub.f32 %v1064_v26, %v1074_v31  ;;  %v1079_v50 = vsel %vm199_vm4, %v1077_v32, 0.0 }
 0xb36   :  { %1080 = vadd.xlane.f32.xlu0 %v1079_v50 }
 0xb37   :  { %v1078_v33 = vmul.f32 %v1076_v57, %v1076_v57 }
 0xb39   :  { %v1082_v34 = vsel %vm199_vm4, %v1078_v33, 0.0 }
 0xb3a   :  { %1083 = vadd.xlane.f32.xlu1 %v1082_v34 }
 0xbbf   :  { %v1081_v36 = vpop.xlane.xlu0 %1080 }
 0xbc0   :  { %v1085_v1 = vmul.f32 0.03125, %v1081_v36 }
 0xbc2   :  { %v1087_v9 = vadd.f32 1e-12, %v1085_v1 }
 0xbc3   :  { %v1084_v37 = vpop.xlane.xlu1 %1083 }
 0xbc4   :  { %2427 = vrsqrt.f32 %v1087_v9  ;;  %v1086_v42 = vmul.f32 0.03125, %v1084_v37 }
 0xbc6   :  { %v1088_v43 = vadd.f32 1e-12, %v1086_v42 }
 0xbc8   :  { %2429 = vrsqrt.f32 %v1088_v43 }
 0xbd1   :  { %v2428_v44 = vpop.eup %2427 }
 0xbd2   :  { %v1091_v45 = vmul.f32 %v2428_v44, %v1075_v30 }
 0xbd4   :  { %v1099_v49 = vmul.f32 %v2005_v46, %v1091_v45 }
 0xbd5   :  { %v2430_v47 = vpop.eup %2429 }
 0xbd6   :  { %v1092_v48 = vmul.f32 %v2430_v47, %v1076_v57  ;;  %v2915_v55 = vadd.f32 %v2006_v52, %v1099_v49 }
 0xbd8   :  { %v1100_v54 = vmul.f32 %v2005_v46, %v1092_v48 }
 0xbda   :  { %v2917_v58 = vadd.f32 %v2006_v52, %v1100_v54 }
 0xbdc   :  { %v1109_v62 = vpack.c.bf16 %v2917_v58, %v2915_v55 }
 0xbde   :  { %2264 = vmatmul.mubr.msk.bf16.vlgmr.msra.gmra.mxu1 %vm199_vm4, %v1109_v62 }
 0xbdf   :  { %2271 = vmatprep.mubr.msk.bf16.mxu1 %vm2457_vm0, %v2456_v2 }
 0xc9e   :  { %v1172_v12 = vpop.f32.mrf.mxu1 }
 0xc9f   :  { %v2927_v3 = vadd.f32 %v2012_v63, %v1172_v12 }
 0xca0   :  { %v2265_v4 = vpop.f32.mrf.mxu1 }
 0xca1   :  { %v1185_v6 = vmul.f32 %v2927_v3, %v2682_v59  ;;  %v1186_v7 = vmul.f32 %v2927_v3, %v2684_v60  ;;  %v1183_v10 = vmul.f32 %v2927_v3, %v2686_v61  ;;  %v1184_v13 = vmul.f32 %v2927_v3, %v2691_v0 }
 0xca2   :  { %v1175_v40 = vpop.f32.mrf.mxu1  ;;  %v1196_v42 = vmul.f32 %v2927_v3, %v2783_v28  ;;  %v1198_v46 = vmul.f32 %v2927_v3, %v2767_v16 }
 0xca3   :  { %v2937_v17 = vadd.f32 %v2012_v63, %v1175_v40  ;;  %v1192_v38 = vpack.c.bf16 %v1186_v7, %v1185_v6  ;;  %v1191_v19 = vpack.c.bf16 %v1184_v13, %v1183_v10 }
 0xca4   :  { %v2266_v20 = vpop.f32.mrf.mxu1 }
 0xca5   :  { %1211 = vrot.lane.b32.xlu0 %v1192_v38, %s2460_s2  ;;  %1209 = vrot.lane.b32.xlu1 %v1191_v19, %s2460_s2  ;;  %v1189_v8 = vmul.f32 %v2937_v17, %v2682_v59  ;;  %v1190_v11 = vmul.f32 %v2937_v17, %v2684_v60  ;;  %v1187_v15 = vmul.f32 %v2937_v17, %v2686_v61  ;;  %v1179_v61 = vmul.f32 0.35355338, %v2927_v3 }
 0xca6   :  { %v1188_v18 = vmul.f32 %v2937_v17, %v2691_v0  ;;  %v1180_v29 = vmul.f32 0.35355338, %v2937_v17  ;;  %v1201_v34 = vmul.f32 %v2937_v17, %v2771_v21  ;;  %v1202_v51 = vmul.f32 %v2937_v17, %v2767_v16 }
 0xca7   :  { %v1194_v22 = vpack.c.bf16 %v1190_v11, %v1189_v8  ;;  %v1181_v25 = vpack.c.bf16 %v1179_v61, %v1179_v61  ;;  %v1199_v48 = vmul.f32 %v2937_v17, %v2775_v41  ;;  %v1200_v49 = vmul.f32 %v2937_v17, %v2783_v28  ;;  %v2389_v8 = vld [vmem:[%s3123_s10 + $0x18] sm:$0xff]  }
 0xca8   :  { %v1193_v23 = vpack.c.bf16 %v1188_v18, %v1187_v15  ;;  %v1182_v30 = vpack.c.bf16 %v1180_v29, %v1180_v29  ;;  %v1206_v37 = vpack.c.bf16 %v1202_v51, %v1201_v34 }
 0xca9   :  { %1266 = vrot.lane.b32.xlu1 %v1194_v22, %s2460_s2  ;;  %v1205_v52 = vpack.c.bf16 %v1200_v49, %v1199_v48 }
 0xcaa   :  { %1264 = vrot.lane.b32.xlu0 %v1193_v23, %s2460_s2  ;;  %v2390_v23 = vld [vmem:[%s3123_s10 + $0x10] sm:$0xff]  }
 0xd17   :  { %v1212_v14 = vpop.permute.xlu0 %1211  ;;  %v1210_v59 = vpop.permute.xlu1 %1209 }
 0xd18   :  { %v1220_v24 = vsel %vm199_vm4, %v1212_v14, 0  ;;  %v1217_v60 = vsel %vm199_vm4, %v1210_v59, 0 }
 0xd19   :  { %2268 = vmatpush3.bf16.xpose.msra.mxu1 %v1220_v24 }
 0xd1a   :  { %2269 = vmatprep.subr.bf16.mxu1 %v2456_v2 }
 0xd1b   :  { %v1267_v0 = vpop.permute.xlu1 %1266 }
 0xd1c   :  { %v1275_v26 = vsel %vm199_vm4, %v1267_v0, 0  ;;  %v1265_v39 = vpop.permute.xlu0 %1264 }
 0xd1d   :  { %v1272_v27 = vsel %vm199_vm4, %v1265_v39, 0 }
 0xd21   :  { %2270 = vmatpush3.bf16.xpose.msra.mxu1 %v1217_v60 }
 0xd22   :  { %2275 = vmatprep.subr.bf16.mxu1 %v2456_v2 }
 0xd28   :  { %2272 = vmatmul.mubr.msk.bf16.vlgmr.msra.gmra.mxu1 %vm199_vm4, %v1181_v25 }
 0xd29   :  { %2276 = vmatpush3.bf16.xpose.msra.mxu1 %v1275_v26  ;;  %2279 = vmatprep.mubr.msk.bf16.mxu1 %vm2457_vm0, %v2456_v2 }
 0xd2a   :  { %2277 = vmatprep.subr.bf16.mxu1 %v2456_v2 }
 0xd31   :  { %2278 = vmatpush3.bf16.xpose.msra.mxu1 %v1272_v27  ;;  %v2026_v27 = vld [vmem:[%s3124_s11 + $0x1] ss:$0 sm:$0xff] }
 0xd32   :  { %2299 = vmatprep.subr.bf16.mxu1 %v2456_v2 }
 0xd38   :  { %2280 = vmatmul.mubr.msk.bf16.vlgmr.msra.gmra.mxu1 %vm199_vm4, %v1182_v30 }
 0xd39   :  { %2303 = vmatprep.mubr.msk.bf16.mxu1 %vm2457_vm0, %v2456_v2 }
 0xde8   :  { %v1256_v56 = vpop.f32.mrf.mxu1 }
 0xde9   :  { %v1257_v31 = vadd.f32 %v1256_v56, %v2737_v53  ;;  %v1195_v53 = vmul.f32 %v2927_v3, %v2775_v41 }
 0xdea   :  { %v2273_v32 = vpop.f32.mrf.mxu1 }
 0xdeb   :  { %v1317_v57 = vsel %vm199_vm4, %v1257_v31, -inf  ;;  %v1203_v45 = vpack.c.bf16 %v1196_v42, %v1195_v53 }
 0xdec   :  { %1318 = vmax.xlane.f32.xlu1 %v1317_v57  ;;  %v1259_v50 = vpop.f32.mrf.mxu1 }
 0xdee   :  { %v2274_v33 = vpop.f32.mrf.mxu1 }
 0xdf8   :  { %v1311_v35 = vpop.f32.mrf.mxu1 }
 0xdf9   :  { %v1312_v36 = vadd.f32 %v1311_v35, %v2741_v5  ;;  %v1197_v5 = vmul.f32 %v2927_v3, %v2771_v21 }
 0xdfa   :  { %v2281_v1 = vpop.f32.mrf.mxu1 }
 0xdfb   :  { %v1320_v9 = vsel %vm199_vm4, %v1312_v36, -inf  ;;  %v1204_v47 = vpack.c.bf16 %v1198_v46, %v1197_v5 }
 0xdfc   :  { %1321 = vmax.xlane.f32.xlu0 %v1320_v9  ;;  %v1314_v43 = vpop.f32.mrf.mxu1 }
 0xdfd   :  { %1435 = vrot.lane.b32.xlu1 %v1206_v37, %s2465_s1 }
 0xdfe   :  { %v2282_v44 = vpop.f32.mrf.mxu1 }
 0xe01   :  { %1382 = vrot.lane.b32.xlu1 %v1203_v45, %s2465_s1  ;;  %v2392_v45 = vld [vmem:[%s3125_s14 + $0x10] sm:$0xff]  }
 0xe12   :  { %1384 = vrot.lane.b32.xlu0 %v1204_v47, %s2465_s1 }
 0xe16   :  { %1433 = vrot.lane.b32.xlu0 %v1205_v52, %s2465_s1 }
 0xe75   :  { %v1319_v54 = vpop.xlane.xlu1 %1318 }
 0xe76   :  { %v1323_v21 = vsub.f32 %v1257_v31, %v1319_v54 }
 0xe78   :  { %v1325_v63 = vmul.f32 1.442695, %v1323_v21  ;;  %v2032_v21 = vld [vmem:[%s3126_s12 + $0x1] ss:$0 sm:$0xff] }
 0xe79   :  { %v1436_v62 = vpop.permute.xlu1 %1435 }
 0xe7a   :  { %2300 = vmatpush3.bf16.msra.mxu1 %v1436_v62  ;;  %2431 = vpow2.f32 %v1325_v63 }
 0xe7b   :  { %2301 = vmatprep.subr.bf16.mxu1 %v2456_v2 }
 0xe7d   :  { %v1383_v10 = vpop.permute.xlu1 %1382 }
 0xe85   :  { %v1322_v16 = vpop.xlane.xlu0 %1321 }
 0xe86   :  { %v1324_v12 = vsub.f32 %v1312_v36, %v1322_v16 }
 0xe87   :  { %v2432_v28 = vpop.eup %2431 }
 0xe88   :  { %v1327_v3 = vmul.f32 1.442695, %v1324_v12 }
 0xe89   :  { %v1385_v41 = vpop.permute.xlu0 %1384 }
 0xe8a   :  { %2433 = vpow2.f32 %v1327_v3  ;;  %v2033_v3 = vld [vmem:[%s3127_s13 + $0x1] ss:$0 sm:$0xff] }
 0xe8d   :  { %v1434_v4 = vpop.permute.xlu0 %1433 }
 0xe8e   :  { %2302 = vmatpush3.bf16.msra.mxu1 %v1434_v4 }
 0xe8f   :  { %2315 = vmatprep.subr.bf16.mxu1 %v2456_v2 }
 0xe97   :  { %v2434_v6 = vpop.eup %2433 }
 0xe98   :  { %v1329_v7 = vpack.c.bf16 %v2434_v6, %v2432_v28 }
 0xe9a   :  { %2288 = vmatmul.mubr.msk.bf16.vlgmr.msra.gmra.mxu0 %vm199_vm4, %v1329_v7  ;;  %v2393_v7 = vld [vmem:[%s3128_s16 + $0x78] sm:$0xff]  }
 0xe9b   :  { %2292 = vmatpush3.bf16.msra.mxu0 %v1385_v41  ;;  %2295 = vmatprep.mubr.msk.bf16.mxu0 %vm2457_vm0, %v2456_v2 }
 0xe9c   :  { %2293 = vmatprep.subr.bf16.mxu0 %v2456_v2 }
 0xe9f   :  { %2294 = vmatpush3.bf16.msra.mxu0 %v1383_v10  ;;  %v2394_v10 = vld [vmem:[%s3128_s16 + $0x70] sm:$0xff]  }
 0xea0   :  { %2307 = vmatprep.subr.bf16.mxu0 %v2456_v2 }
 0xf5a   :  { %v1367_v13 = vpop.f32.mrf.mxu0 }
 0xf5b   :  { %2435 = vrcp.f32 %v1367_v13  ;;  %v2395_v13 = vld [vmem:[%s3128_s16 + $0x68] sm:$0xff]  }
 0xf5c   :  { %v2289_v40 = vpop.f32.mrf.mxu0 }
 0xf5d   :  { %v2396_v40 = vld [vmem:[%s3128_s16 + $0x60] sm:$0xff]  }
 0xf5e   :  { %v1370_v17 = vpop.f32.mrf.mxu0 }
 0xf5f   :  { %2437 = vrcp.f32 %v1370_v17  ;;  %v2397_v17 = vld [vmem:[%s3128_s16 + $0x58] sm:$0xff]  }
 0xf60   :  { %v2290_v38 = vpop.f32.mrf.mxu0 }
 0xf61   :  { %v2398_v38 = vld [vmem:[%s3128_s16 + $0x50] sm:$0xff]  }
 0xf68   :  { %v2436_v19 = vpop.eup %2435 }
 0xf69   :  { %v1376_v20 = vmul.f32 %v2436_v19, %v2432_v28  ;;  %v2399_v19 = vld [vmem:[%s3128_s16 + $0x48] sm:$0xff]  }
 0xf6b   :  { %v1378_v11 = vpack.c.bf16 %v1376_v20, %v1376_v20  ;;  %v2400_v20 = vld [vmem:[%s3128_s16 + $0x40] sm:$0xff]  }
 0xf6c   :  { %v2438_v15 = vpop.eup %2437 }
 0xf6d   :  { %2296 = vmatmul.mubr.msk.bf16.vlgmr.msra.gmra.mxu0 %vm199_vm4, %v1378_v11  ;;  %v1377_v18 = vmul.f32 %v2438_v15, %v2434_v6 }
 0xf6e   :  { %2308 = vmatpush3.bf16.msra.mxu0 %v2389_v8  ;;  %2311 = vmatprep.mubr.msk.bf16.mxu0 %vm2457_vm0, %v2456_v2  ;;  %v2039_v8 = vld [vmem:[%s3129_s15 + $0x1] ss:$0 sm:$0xff] }
 0xf6f   :  { %v1379_v22 = vpack.c.bf16 %v1377_v18, %v1377_v18  ;;  %2309 = vmatprep.subr.bf16.mxu0 %v2456_v2 }
 0xf71   :  { %2304 = vmatmul.mubr.msk.bf16.vlgmr.msra.gmra.mxu1 %vm199_vm4, %v1379_v22 }
 0xf72   :  { %2319 = vmatprep.mubr.msk.bf16.mxu1 %vm2457_vm0, %v2456_v2  ;;  %2310 = vmatpush3.bf16.msra.mxu0 %v2390_v23 }
 0xf73   :  { %2323 = vmatprep.subr.bf16.mxu0 %v2456_v2 }
0x102d   :  { %v1425_v14 = vpop.f32.mrf.mxu0 }
0x102f   :  { %v2297_v24 = vpop.f32.mrf.mxu0 }
0x1031   :  { %v1428_v59 = vpop.f32.mrf.mxu0  ;;  %v1476_v60 = vpop.f32.mrf.mxu1 }
0x1032   :  { %v1482_v61 = vpack.c.bf16 %v1476_v60, %v1425_v14 }
0x1033   :  { %v2298_v0 = vpop.f32.mrf.mxu0  ;;  %v2305_v25 = vpop.f32.mrf.mxu1 }
0x1034   :  { %2312 = vmatmul.mubr.msk.bf16.vlgmr.msra.gmra.mxu0 %vm199_vm4, %v1482_v61 }
0x1035   :  { %v1479_v26 = vpop.f32.mrf.mxu1  ;;  %2339 = vmatprep.mubr.msk.bf16.mxu0 %vm2457_vm0, %v2456_v2  ;;  %2324 = vmatpush3.bf16.msra.mxu0 %v2393_v7 }
0x1036   :  { %2325 = vmatprep.subr.bf16.mxu0 %v2456_v2 }
0x1037   :  { %v2306_v39 = vpop.f32.mrf.mxu1 }
0x1039   :  { %2326 = vmatpush3.bf16.msra.mxu0 %v2394_v10 }
0x103a   :  { %2327 = vmatprep.subr.bf16.mxu0 %v2456_v2 }
0x103d   :  { %2328 = vmatpush3.bf16.msra.mxu0 %v2395_v13 }
0x103e   :  { %2329 = vmatprep.subr.bf16.mxu0 %v2456_v2 }
0x1041   :  { %2330 = vmatpush3.bf16.msra.mxu0 %v2396_v40 }
0x1042   :  { %2331 = vmatprep.subr.bf16.mxu0 %v2456_v2 }
0x1045   :  { %2332 = vmatpush3.bf16.msra.mxu0 %v2397_v17 }
0x1046   :  { %2333 = vmatprep.subr.bf16.mxu0 %v2456_v2 }
0x1049   :  { %2334 = vmatpush3.bf16.msra.mxu0 %v2398_v38  ;;  %v2060_v38 = vld [vmem:[%s3130_s17 + $0x1] ss:$0 sm:$0xff] }
0x104a   :  { %2335 = vmatprep.subr.bf16.mxu0 %v2456_v2 }
0x104d   :  { %2336 = vmatpush3.bf16.msra.mxu0 %v2399_v19 }
0x104e   :  { %2337 = vmatprep.subr.bf16.mxu0 %v2456_v2 }
0x1051   :  { %2338 = vmatpush3.bf16.msra.mxu0 %v2400_v20 }
0x10f4   :  { %v1545_v29 = vpop.f32.mrf.mxu0 }
0x10f5   :  { %v1546_v30 = vadd.f32 %v2026_v27, %v1545_v29 }
0x10f6   :  { %v2313_v56 = vpop.f32.mrf.mxu0 }
0x10f7   :  { %v1552_v31 = vadd.f32 %v1546_v30, %v2915_v55 }
0x10f8   :  { %v1548_v32 = vpop.f32.mrf.mxu0 }
0x10f9   :  { %v1549_v57 = vadd.f32 %v2026_v27, %v1548_v32  ;;  %v1558_v50 = vsel %vm199_vm4, %v1552_v31, 0.0 }
0x10fa   :  { %1559 = vadd.xlane.f32.xlu1 %v1558_v50  ;;  %v2314_v33 = vpop.f32.mrf.mxu0 }
0x10fb   :  { %v1553_v34 = vadd.f32 %v1549_v57, %v2917_v58  ;;  %v2391_v58 = vld [vmem:[%s3125_s14 + $0x18] sm:$0xff]  }
0x10fc   :  { %2316 = vmatpush3.bf16.msra.mxu1 %v2391_v58 }
0x10fd   :  { %v1561_v51 = vsel %vm199_vm4, %v1553_v34, 0.0  ;;  %2317 = vmatprep.subr.bf16.mxu1 %v2456_v2 }
0x10fe   :  { %1562 = vadd.xlane.f32.xlu0 %v1561_v51 }
0x1100   :  { %2318 = vmatpush3.bf16.msra.mxu1 %v2392_v45 }
0x1101   :  { %2343 = vmatprep.subr.bf16.mxu1 %v2456_v2 }
0x1183   :  { %v1560_v35 = vpop.xlane.xlu1 %1559 }
0x1184   :  { %v1564_v36 = vmul.f32 0.03125, %v1560_v35 }
0x1186   :  { %v1566_v1 = vsub.f32 %v1552_v31, %v1564_v36 }
0x1187   :  { %v1563_v9 = vpop.xlane.xlu0 %1562 }
0x1188   :  { %v1565_v37 = vmul.f32 0.03125, %v1563_v9  ;;  %v1568_v53 = vmul.f32 %v1566_v1, %v1566_v1 }
0x118a   :  { %v1567_v42 = vsub.f32 %v1553_v34, %v1565_v37  ;;  %v1570_v55 = vsel %vm199_vm4, %v1568_v53, 0.0 }
0x118b   :  { %1571 = vadd.xlane.f32.xlu0 %v1570_v55 }
0x118c   :  { %v1569_v43 = vmul.f32 %v1567_v42, %v1567_v42 }
0x118e   :  { %v1573_v44 = vsel %vm199_vm4, %v1569_v43, 0.0 }
0x118f   :  { %1574 = vadd.xlane.f32.xlu1 %v1573_v44 }
0x1214   :  { %v1572_v5 = vpop.xlane.xlu0 %1571 }
0x1215   :  { %v1576_v46 = vmul.f32 0.03125, %v1572_v5 }
0x1217   :  { %v1578_v47 = vadd.f32 1e-12, %v1576_v46 }
0x1218   :  { %v1575_v48 = vpop.xlane.xlu1 %1574 }
0x1219   :  { %2439 = vrsqrt.f32 %v1578_v47  ;;  %v1577_v49 = vmul.f32 0.03125, %v1575_v48 }
0x121b   :  { %v1579_v52 = vadd.f32 1e-12, %v1577_v49 }
0x121d   :  { %2441 = vrsqrt.f32 %v1579_v52 }
0x1226   :  { %v2440_v54 = vpop.eup %2439 }
0x1227   :  { %v1582_v62 = vmul.f32 %v2440_v54, %v1566_v1 }
0x1229   :  { %v1590_v12 = vmul.f32 %v2032_v21, %v1582_v62 }
0x122a   :  { %v2442_v63 = vpop.eup %2441 }
0x122b   :  { %v1583_v16 = vmul.f32 %v2442_v63, %v1567_v42  ;;  %v3038_v4 = vadd.f32 %v2033_v3, %v1590_v12 }
0x122d   :  { %v1591_v41 = vmul.f32 %v2032_v21, %v1583_v16 }
0x122f   :  { %v3040_v28 = vadd.f32 %v2033_v3, %v1591_v41 }
0x1231   :  { %v1600_v6 = vpack.c.bf16 %v3040_v28, %v3038_v4 }
0x1233   :  { %2320 = vmatmul.mubr.msk.bf16.vlgmr.msra.gmra.mxu1 %vm199_vm4, %v1600_v6 }
0x1234   :  { %2347 = vmatprep.mubr.msk.bf16.mxu1 %vm2457_vm0, %v2456_v2 }
0x12f3   :  { %v1663_v11 = vpop.f32.mrf.mxu1 }
0x12f4   :  { %v1664_v15 = vadd.f32 %v2039_v8, %v1663_v11 }
0x12f5   :  { %v2321_v18 = vpop.f32.mrf.mxu1 }
0x12f6   :  { %v1672_v22 = vmul.f32 0.70710677, %v1664_v15  ;;  %v1670_v6 = vmul.f32 0.5, %v1664_v15 }
0x12f7   :  { %v1666_v23 = vpop.f32.mrf.mxu1 }
0x12f8   :  { %v1674_v14 = vand.u32 2147483647, %v1672_v22  ;;  %v1667_v24 = vadd.f32 %v2039_v8, %v1666_v23  ;;  %vm1714_vm10 = vcmp.lt.f32.partialorder %v1672_v22, 0.0 }
0x12f9   :  { %v2322_v59 = vpop.f32.mrf.mxu1 }
0x12fa   :  { %v1676_v60 = vmul.f32 0.3275911, %v1674_v14  ;;  %v1673_v61 = vmul.f32 0.70710677, %v1667_v24  ;;  %v1702_v27 = vsub.f32 0.0, %v1674_v14  ;;  %v1671_v7 = vmul.f32 0.5, %v1667_v24 }
0x12fc   :  { %v1678_v0 = vadd.f32 1.0, %v1676_v60  ;;  %v1675_v25 = vand.u32 2147483647, %v1673_v61  ;;  %v1704_v29 = vmul.f32 %v1702_v27, %v1674_v14  ;;  %vm1715_vm11 = vcmp.lt.f32.partialorder %v1673_v61, 0.0 }
0x12fe   :  { %2443 = vrcp.f32 %v1678_v0  ;;  %v1677_v26 = vmul.f32 0.3275911, %v1675_v25  ;;  %v1703_v30 = vsub.f32 0.0, %v1675_v25  ;;  %v1706_v32 = vmul.f32 1.442695, %v1704_v29 }
0x1300   :  { %v1679_v39 = vadd.f32 1.0, %v1677_v26  ;;  %v1705_v57 = vmul.f32 %v1703_v30, %v1675_v25  ;;  %v2402_v30 = vld [vmem:[%s3133_s20] sm:$0xff]  }
0x1302   :  { %2445 = vrcp.f32 %v1679_v39  ;;  %v1708_v35 = vmul.f32 1.442695, %v1705_v57 }
0x1303   :  { %2447 = vpow2.f32 %v1706_v32 }
0x1304   :  { %2449 = vpow2.f32 %v1708_v35  ;;  %v2071_v35 = vld [vmem:[%s3131_s18 + $0x1] ss:$0 sm:$0xff] }
0x130b   :  { %v2444_v56 = vpop.eup %2443 }
0x130c   :  { %v1684_v31 = vmul.f32 1.0614054, %v2444_v56 }
0x130e   :  { %v1686_v50 = vadd.f32 -1.4531521, %v1684_v31 }
0x130f   :  { %v2446_v33 = vpop.eup %2445 }
0x1310   :  { %v1688_v34 = vmul.f32 %v2444_v56, %v1686_v50  ;;  %v1685_v51 = vmul.f32 1.0614054, %v2446_v33  ;;  %v2448_v46 = vpop.eup %2447 }
0x1311   :  { %v2450_v54 = vpop.eup %2449 }
0x1312   :  { %v1690_v36 = vadd.f32 1.4214138, %v1688_v34  ;;  %v1687_v1 = vadd.f32 -1.4531521, %v1685_v51 }
0x1314   :  { %v1692_v9 = vmul.f32 %v2444_v56, %v1690_v36  ;;  %v1689_v37 = vmul.f32 %v2446_v33, %v1687_v1 }
0x1316   :  { %v1694_v53 = vadd.f32 -0.28449672, %v1692_v9  ;;  %v1691_v42 = vadd.f32 1.4214138, %v1689_v37 }
0x1318   :  { %v1696_v55 = vmul.f32 %v2444_v56, %v1694_v53  ;;  %v1693_v43 = vmul.f32 %v2446_v33, %v1691_v42 }
0x131a   :  { %v1698_v44 = vadd.f32 0.2548296, %v1696_v55  ;;  %v1695_v58 = vadd.f32 -0.28449672, %v1693_v43  ;;  %v2073_v43 = vld [vmem:[%s3134_s21] ss:$0 sm:$0xff] }
0x131c   :  { %v1700_v45 = vmul.f32 %v2444_v56, %v1698_v44  ;;  %v1697_v5 = vmul.f32 %v2446_v33, %v1695_v58 }
0x131e   :  { %v1710_v47 = vmul.f32 %v2448_v46, %v1700_v45  ;;  %v1699_v48 = vadd.f32 0.2548296, %v1697_v5 }
0x1320   :  { %v1712_v49 = vsub.f32 1.0, %v1710_v47  ;;  %v1701_v52 = vmul.f32 %v2446_v33, %v1699_v48 }
0x1322   :  { %v1716_v62 = vsub.f32 0.0, %v1712_v49  ;;  %v1711_v21 = vmul.f32 %v2450_v54, %v1701_v52 }
0x1324   :  { %v1718_v63 = vsel %vm1714_vm10, %v1716_v62, %v1712_v49  ;;  %v1713_v16 = vsub.f32 1.0, %v1711_v21 }
0x1325   :  { %v1720_v3 = vadd.f32 1.0, %v1718_v63 }
0x1326   :  { %v1717_v12 = vsub.f32 0.0, %v1713_v16 }
0x1327   :  { %v1722_v13 = vmul.f32 %v1720_v3, %v1670_v6 }
0x1328   :  { %v1719_v41 = vsel %vm1715_vm11, %v1717_v12, %v1713_v16 }
0x1329   :  { %v1721_v10 = vadd.f32 1.0, %v1719_v41 }
0x132b   :  { %v1723_v40 = vmul.f32 %v1721_v10, %v1671_v7 }
0x132d   :  { %v1724_v17 = vpack.c.bf16 %v1723_v40, %v1722_v13 }
0x132f   :  { %2340 = vmatmul.mubr.bf16.vlgmr.msra.gmra.mxu0 %v1724_v17 }
0x13ef   :  { %v1832_v19 = vpop.f32.mrf.mxu0 }
0x13f0   :  { %v1833_v20 = vadd.f32 %v2060_v38, %v1832_v19 }
0x13f1   :  { %v2341_v8 = vpop.f32.mrf.mxu0 }
0x13f2   :  { %v1839_v11 = vadd.f32 %v1833_v20, %v3038_v4 }
0x13f3   :  { %v1835_v18 = vpop.f32.mrf.mxu0 }
0x13f4   :  { %v1836_v22 = vadd.f32 %v2060_v38, %v1835_v18  ;;  %v1845_v23 = vsel %vm199_vm4, %v1839_v11, 0.0 }
0x13f5   :  { %1846 = vadd.xlane.f32.xlu0 %v1845_v23  ;;  %v2342_v15 = vpop.f32.mrf.mxu0 }
0x13f6   :  { %v1840_v14 = vadd.f32 %v1836_v22, %v3040_v28  ;;  %v2401_v28 = vld [vmem:[%s3133_s20 + $0x8] sm:$0xff]  }
0x13f7   :  { %2344 = vmatpush3.bf16.msra.mxu1 %v2401_v28 }
0x13f8   :  { %v1848_v24 = vsel %vm199_vm4, %v1840_v14, 0.0  ;;  %2345 = vmatprep.subr.bf16.mxu1 %v2456_v2  ;;  %v2072_v2 = vld [vmem:[%s3132_s19 + $0x1] ss:$0 sm:$0xff] }
0x13f9   :  { %1849 = vadd.xlane.f32.xlu1 %v1848_v24 }
0x13fb   :  { %2346 = vmatpush3.bf16.msra.mxu1 %v2402_v30 }
0x147e   :  { %v1847_v59 = vpop.xlane.xlu0 %1846 }
0x147f   :  { %v1851_v60 = vmul.f32 0.03125, %v1847_v59 }
0x1481   :  { %v1853_v61 = vsub.f32 %v1839_v11, %v1851_v60 }
0x1482   :  { %v1850_v0 = vpop.xlane.xlu1 %1849 }
0x1483   :  { %v1852_v25 = vmul.f32 0.03125, %v1850_v0  ;;  %v1855_v26 = vmul.f32 %v1853_v61, %v1853_v61 }
0x1485   :  { %v1854_v39 = vsub.f32 %v1840_v14, %v1852_v25  ;;  %v1857_v4 = vsel %vm199_vm4, %v1855_v26, 0.0 }
0x1486   :  { %1858 = vadd.xlane.f32.xlu0 %v1857_v4 }
0x1487   :  { %v1856_v27 = vmul.f32 %v1854_v39, %v1854_v39 }
0x1489   :  { %v1860_v29 = vsel %vm199_vm4, %v1856_v27, 0.0 }
0x148a   :  { %1861 = vadd.xlane.f32.xlu1 %v1860_v29 }
0x150f   :  { %v1859_v56 = vpop.xlane.xlu0 %1858 }
0x1510   :  { %v1863_v31 = vmul.f32 0.03125, %v1859_v56 }
0x1512   :  { %v1865_v32 = vadd.f32 1e-12, %v1863_v31 }
0x1513   :  { %v1862_v57 = vpop.xlane.xlu1 %1861 }
0x1514   :  { %2451 = vrsqrt.f32 %v1865_v32  ;;  %v1864_v50 = vmul.f32 0.03125, %v1862_v57 }
0x1516   :  { %v1866_v33 = vadd.f32 1e-12, %v1864_v50 }
0x1518   :  { %2453 = vrsqrt.f32 %v1866_v33 }
0x1521   :  { %v2452_v34 = vpop.eup %2451 }
0x1522   :  { %v1869_v51 = vmul.f32 %v2452_v34, %v1853_v61 }
0x1524   :  { %v1877_v9 = vmul.f32 %v2071_v35, %v1869_v51 }
0x1525   :  { %v2454_v36 = vpop.eup %2453 }
0x1526   :  { %v1870_v1 = vmul.f32 %v2454_v36, %v1854_v39  ;;  %v1885_v53 = vadd.f32 %v2072_v2, %v1877_v9 }
0x1528   :  { %v1878_v37 = vmul.f32 %v2071_v35, %v1870_v1 }
0x152a   :  { %v1886_v42 = vadd.f32 %v2072_v2, %v1878_v37 }
0x152c   :  { %v1887_v55 = vpack.c.bf16 %v1886_v42, %v1885_v53 }
0x152e   :  { %2348 = vmatmul.mubr.msk.bf16.vlgmr.msra.gmra.mxu1 %vm199_vm4, %v1887_v55 }
0x15ee   :  { %v1948_v44 = vpop.f32.mrf.mxu1 }
0x15ef   :  { %v1949_v58 = vadd.f32 %v2073_v43, %v1948_v44 }
0x15f0   :  { %v2349_v45 = vpop.f32.mrf.mxu1 }
0x15f1   :  { %1955 = vst [vmem:[%s3135_s22] sm:$0xff] %v1949_v58 }
0x15f2   :  { %v1951_v5 = vpop.f32.mrf.mxu1 }
0x15f3   :  { %v1952_v46 = vadd.f32 %v2073_v43, %v1951_v5 }
0x15f4   :  { %v2350_v47 = vpop.f32.mrf.mxu1 }
0x15f5   :  { %1956 = vst [vmem:[%s3135_s22 + $0x8] sm:$0xff] %v1952_v46 }

</bundles_post_ra>
